<compile_context>
chip_gen: v6e
topology: v6e:2x2x1
jax: 0.10.0
libtpu: 0.0.40
codegen_flags: <defaults>
</compile_context>

<pallas_src>
import jax
import jax.numpy as jnp
from jax.experimental import pallas as pl
from jax.experimental.pallas import tpu as pltpu


def _round_up(n, m):
    return ((n + m - 1) // m) * m


def _tnet_kernel(x_ref, w1_ref, b1_ref, w2_ref, c2_ref, out_ref):
    f32, bf16 = jnp.float32, jnp.bfloat16
    # fc1 (HT chain folded into W1): one long-K, full-width MXU matmul.
    h = jnp.dot(x_ref[...], w1_ref[...], preferred_element_type=f32)   # (TB, 1024)
    # bias + ReLU in f32, then one bf16 hop onto the MXU operand path.
    h = jnp.maximum(h + b1_ref[...], 0.0).astype(bf16)
    # fc2 (classes padded to 128 lanes for an unmasked lane-dense store).
    logits = jnp.dot(h, w2_ref[...], preferred_element_type=f32)       # (TB, 128)
    out_ref[...] = logits + c2_ref[...]


def _choose_tile(batch, tile_batch):
    b16 = _round_up(max(batch, 1), 16)
    tb = max(16, min(_round_up(tile_batch, 16), b16))
    # Prefer >= 2 parallel tiles when the batch allows it (v7x has 2 TCs).
    if b16 >= 32 and b16 // tb < 2:
        tb = max(16, _round_up((b16 + 1) // 2, 16))
    padded = _round_up(b16, tb)
    return tb, padded


def tnet_forward(x, params, *, tile_batch=256):
    u1, u2, u3 = params['u1'], params['u2'], params['u3']
    b2, b1m, b1 = params['b2'], params['b1m'], params['b1']
    w2, c2 = params['w2'], params['c2']
    batch = x.shape[0]
    f32, bf16 = jnp.float32, jnp.bfloat16

    TB, padded = _choose_tile(batch, tile_batch)
    grid = (padded // TB,)

    # ---- activations: plain (batch, 1024), zero-padded rows, bf16 ----------
    xp = jnp.pad(x, ((0, padded - batch), (0, 0))).astype(bf16)

    # ---- fold the HT factors into a dense fc1 weight (exact, f32) ----------
    # input flat order (a, b, c); output flat order (d, h, j) -- matches the
    # reference's x.reshape(z,8,8,16) and h.reshape(z,1024).
    w1 = jnp.einsum('ade,efg,bhf,gi,cji->abcdhj', u1, b2, u2, b1m, u3)
    w1 = w1.reshape(1024, 1024).astype(bf16)
    b1p = b1.reshape(1, 1024).astype(f32)                    # (D,H,J) order
    w2p = jnp.pad(w2.T, ((0, 0), (0, 118))).astype(bf16)     # (1024, 128)
    c2p = jnp.pad(c2, (0, 118)).reshape(1, 128).astype(f32)  # (1, 128)

    out = pl.pallas_call(
        _tnet_kernel,
        out_shape=jax.ShapeDtypeStruct((padded, 128), f32),
        grid=grid,
        in_specs=[
            pl.BlockSpec((TB, 1024), lambda i: (i, 0)),      # x tile
            pl.BlockSpec((1024, 1024), lambda i: (0, 0)),    # W1 (HT chain folded)
            pl.BlockSpec((1, 1024), lambda i: (0, 0)),       # fc1 bias
            pl.BlockSpec((1024, 128), lambda i: (0, 0)),     # fc2 weight (padded)
            pl.BlockSpec((1, 128), lambda i: (0, 0)),        # fc2 bias (padded)
        ],
        out_specs=pl.BlockSpec((TB, 128), lambda i: (i, 0)),  # lane-dense logits slab
        compiler_params=pltpu.CompilerParams(
            dimension_semantics=("parallel",),
            vmem_limit_bytes=32 * 1024 * 1024),
    )(xp, w1, b1p, w2p, c2p)
    return out[:batch, :10]


def tnet_reference(x, params):
    """Pure-JAX mirror of the PyTorch forward (for validation)."""
    u1, u2, u3 = params['u1'], params['u2'], params['u3']
    b2, b1m, b1 = params['b2'], params['b1m'], params['b1']
    w2, c2 = params['w2'], params['c2']
    z = x.shape[0]
    h = x.reshape(z, 8, 8, 16)
    h = jnp.einsum('zabc,ade->zbcde', h, u1)
    h = jnp.einsum('zabcd,def->zabcef', h, b2)
    h = jnp.einsum('zabcde,afd->zbcef', h, u2)
    h = jnp.einsum('zabcd,ce->zabde', h, b1m)
    h = jnp.einsum('zabcd,aed->zbce', h, u3)
    h = h + b1
    h = h.reshape(z, 1024)
    h = jnp.maximum(h, 0.0)
    return h @ w2.T + c2


if __name__ == "__main__":
    key = jax.random.PRNGKey(0)
    ks = jax.random.split(key, 9)
    s = 0.1
    params = {
        'u1': jax.random.normal(ks[0], (8, 8, 16), jnp.float32) * s,     # (N0, M0, rank)
        'u2': jax.random.normal(ks[1], (8, 8, 16), jnp.float32) * s,     # (N1, M1, rank)
        'u3': jax.random.normal(ks[2], (16, 16, 16), jnp.float32) * s,   # (N2, M2, rank)
        'b2': jax.random.normal(ks[3], (16, 16, 16), jnp.float32) * s,   # HT transfer core
        'b1m': jax.random.normal(ks[4], (16, 16), jnp.float32) * s,      # root core
        'b1': jax.random.normal(ks[5], (8, 8, 16), jnp.float32) * s,     # fc1 bias (8,8,16)
        'w2': jax.random.normal(ks[6], (10, 1024), jnp.float32) * s,     # fc2 weight
        'c2': jax.random.normal(ks[7], (10,), jnp.float32) * s,          # fc2 bias
    }
    x = jax.random.normal(ks[8], (2, 1024), jnp.float32)                 # batch=2, 1024 features

    out = jax.block_until_ready(jax.jit(tnet_forward)(x, params))
    ref = jax.block_until_ready(tnet_reference(x, params))

    assert out.shape == (2, 10) and out.dtype == jnp.float32
    max_err = float(jnp.max(jnp.abs(out - ref)))
    rel = max_err / (float(jnp.max(jnp.abs(ref))) + 1e-6)
    assert rel < 5e-2, f"kernel/reference mismatch: abs={max_err}, rel={rel}"
    print("KERNEL_OK")
</pallas_src>

<mosaic_0001>
module attributes {stable_mosaic.version = 11 : i64} {
  func.func @_tnet_kernel(%arg0: i32, %arg1: memref<16x1024xbf16, #tpu.memory_space<vmem>>, %arg2: memref<1024x1024xbf16, #tpu.memory_space<vmem>>, %arg3: memref<1x1024xf32, #tpu.memory_space<vmem>>, %arg4: memref<1024x128xbf16, #tpu.memory_space<vmem>>, %arg5: memref<1x128xf32, #tpu.memory_space<vmem>>, %arg6: memref<16x128xf32, #tpu.memory_space<vmem>>) attributes {dimension_semantics = [#tpu.dimension_semantics<parallel>], iteration_bounds = array<i64: 1>, scalar_prefetch = 0 : i64, scratch_operands = 0 : i64, tpu.core_type = #tpu.core_type<tc>, window_params = [{transform_indices = @transform_0, window_bounds = array<i64: 16, 1024>}, {pipeline_mode = #tpu.pipeline_mode<synchronous>, transform_indices = @transform_1, window_bounds = array<i64: 1024, 1024>}, {pipeline_mode = #tpu.pipeline_mode<synchronous>, transform_indices = @transform_2, window_bounds = array<i64: 1, 1024>}, {pipeline_mode = #tpu.pipeline_mode<synchronous>, transform_indices = @transform_3, window_bounds = array<i64: 1024, 128>}, {pipeline_mode = #tpu.pipeline_mode<synchronous>, transform_indices = @transform_4, window_bounds = array<i64: 1, 128>}, {transform_indices = @transform_5, window_bounds = array<i64: 16, 128>}]} {
    %c0 = arith.constant 0 : index
    %c0_0 = arith.constant 0 : index
    %0 = vector.load %arg1[%c0, %c0_0] : memref<16x1024xbf16, #tpu.memory_space<vmem>>, vector<16x1024xbf16>
    %c0_1 = arith.constant 0 : index
    %c0_2 = arith.constant 0 : index
    %1 = vector.load %arg2[%c0_1, %c0_2] : memref<1024x1024xbf16, #tpu.memory_space<vmem>>, vector<1024x1024xbf16>
    %cst = arith.constant dense<0.000000e+00> : vector<16x1024xf32>
    %2 = tpu.matmul %0, %1, %cst {dimension_numbers = #tpu.dot_dimension_numbers<[1], [0], [0], [1], [0, 0, 1, 1], [], []>} : vector<16x1024xbf16>, vector<1024x1024xbf16>, vector<16x1024xf32> -> vector<16x1024xf32>
    %c0_3 = arith.constant 0 : index
    %c0_4 = arith.constant 0 : index
    %3 = vector.load %arg3[%c0_3, %c0_4] : memref<1x1024xf32, #tpu.memory_space<vmem>>, vector<1x1024xf32>
    %4 = vector.broadcast %3 : vector<1x1024xf32> to vector<16x1024xf32>
    %5 = arith.addf %2, %4 : vector<16x1024xf32>
    %cst_5 = arith.constant 0.000000e+00 : f32
    %6 = vector.broadcast %cst_5 : f32 to vector<16x1024xf32>
    %7 = arith.maximumf %5, %6 : vector<16x1024xf32>
    %8 = arith.truncf %7 : vector<16x1024xf32> to vector<16x1024xbf16>
    %c0_6 = arith.constant 0 : index
    %c0_7 = arith.constant 0 : index
    %9 = vector.load %arg4[%c0_6, %c0_7] : memref<1024x128xbf16, #tpu.memory_space<vmem>>, vector<1024x128xbf16>
    %cst_8 = arith.constant dense<0.000000e+00> : vector<16x128xf32>
    %10 = tpu.matmul %8, %9, %cst_8 {dimension_numbers = #tpu.dot_dimension_numbers<[1], [0], [0], [1], [0, 0, 1, 1], [], []>} : vector<16x1024xbf16>, vector<1024x128xbf16>, vector<16x128xf32> -> vector<16x128xf32>
    %c0_9 = arith.constant 0 : index
    %c0_10 = arith.constant 0 : index
    %11 = vector.load %arg5[%c0_9, %c0_10] : memref<1x128xf32, #tpu.memory_space<vmem>>, vector<1x128xf32>
    %12 = vector.broadcast %11 : vector<1x128xf32> to vector<16x128xf32>
    %13 = arith.addf %10, %12 : vector<16x128xf32>
    %c0_11 = arith.constant 0 : index
    %c0_12 = arith.constant 0 : index
    %14 = vector.load %arg6[%c0_11, %c0_12] : memref<16x128xf32, #tpu.memory_space<vmem>>, vector<16x128xf32>
    tpu.vector_store %arg6[%c0_11, %c0_12], %13 {strides = array<i32>} : memref<16x128xf32, #tpu.memory_space<vmem>>, vector<16x128xf32>,
    return
  }
  func.func @transform_0(%arg0: i32) -> (i32, i32) {
    %c0_i32 = arith.constant 0 : i32
    %c0_i32_0 = arith.constant 0 : i32
    return %arg0, %c0_i32 : i32, i32
  }
  func.func @transform_1(%arg0: i32) -> (i32, i32) {
    %c0_i32 = arith.constant 0 : i32
    %c0_i32_0 = arith.constant 0 : i32
    %c0_i32_1 = arith.constant 0 : i32
    return %c0_i32, %c0_i32_0 : i32, i32
  }
  func.func @transform_2(%arg0: i32) -> (i32, i32) {
    %c0_i32 = arith.constant 0 : i32
    %c0_i32_0 = arith.constant 0 : i32
    %c0_i32_1 = arith.constant 0 : i32
    return %c0_i32, %c0_i32_0 : i32, i32
  }
  func.func @transform_3(%arg0: i32) -> (i32, i32) {
    %c0_i32 = arith.constant 0 : i32
    %c0_i32_0 = arith.constant 0 : i32
    %c0_i32_1 = arith.constant 0 : i32
    return %c0_i32, %c0_i32_0 : i32, i32
  }
  func.func @transform_4(%arg0: i32) -> (i32, i32) {
    %c0_i32 = arith.constant 0 : i32
    %c0_i32_0 = arith.constant 0 : i32
    %c0_i32_1 = arith.constant 0 : i32
    return %c0_i32, %c0_i32_0 : i32, i32
  }
  func.func @transform_5(%arg0: i32) -> (i32, i32) {
    %c0_i32 = arith.constant 0 : i32
    %c0_i32_0 = arith.constant 0 : i32
    return %arg0, %c0_i32 : i32, i32
  }
}

</mosaic_0001>

<bundles_post_ra>
// kernel: tnet_forward.1
= control target key start
LH: loop header
LB: loop body
LE: loop exit
PB: predicated region body
PF: predicated region fallthrough
CT: control target
= control target key end

     0   :  { %s7293_s1 = inlined_call_operand.vmem [shape: bf16[1024,1024], index: 1, kind: input, shape index: {}]   ;;  %s7294_s0 = inlined_call_operand.vmem [shape: bf16[16,1024], index: 0, kind: input, shape index: {}]   ;;  %s7295_s3 = inlined_call_operand.vmem [shape: bf16[1024,128], index: 3, kind: input, shape index: {}]   ;;  %s7296_s2 = inlined_call_operand.vmem [shape: f32[1,1024], index: 2, kind: input, shape index: {}]   ;;  %s7297_s4 = inlined_call_operand.vmem [shape: f32[1,128], index: 4, kind: input, shape index: {}]   ;;  %s7298_s5 = inlined_call_operand.vmem [shape: f32[16,128], index: 5, kind: output, shape index: {}]  }
   0x1   :  { %v85_v0 = vld [vmem:[%s7293_s1 + $0x1c0] sm:$0xff]  ;;  %v5458_v59 = vld [vmem:[%s7294_s0 + $0x8] sm:$0xff] }
   0x2   :  { %v89_v1 = vld [vmem:[%s7293_s1 + $0x1e0] sm:$0xff]  ;;  %v5463_v60 = vld [vmem:[%s7294_s0 + $0x28] sm:$0xff] }
   0x3   :  { %v213_v2 = vld [vmem:[%s7293_s1 + $0x5c0] sm:$0xff]  ;;  %v4649_v3 = vcombine.high %v85_v0, %v89_v1  ;;  %v4648_v5 = vcombine.low %v85_v0, %v89_v1  ;;  %v5473_v63 = vcombine.high %v5458_v59, %v5463_v60 }
   0x4   :  { %v217_v4 = vld [vmem:[%s7293_s1 + $0x5e0] sm:$0xff] }
   0x5   :  { %v77_v6 = vld [vmem:[%s7293_s1 + $0x180] sm:$0xff]  ;;  %v4777_v8 = vcombine.high %v213_v2, %v217_v4  ;;  %v4776_v9 = vcombine.low %v213_v2, %v217_v4  ;;  %3183 = vmatprep.subr.bf16.mxu0 %v4649_v3  ;;  %3258 = vmatprep.mubr.bf16.mxu1 %v5473_v63 }
   0x6   :  { %v81_v7 = vld [vmem:[%s7293_s1 + $0x1a0] sm:$0xff]  ;;  %3184 = vmatpush1.bf16.msra.mxu0 %v4648_v5 }
   0x7   :  { %v4641_v10 = vcombine.high %v77_v6, %v81_v7  ;;  %v205_v11 = vld [vmem:[%s7293_s1 + $0x580] sm:$0xff]  ;;  %3226 = vmatprep.subr.bf16.mxu1 %v4777_v8  ;;  %v4640_v18 = vcombine.low %v77_v6, %v81_v7 }
   0x8   :  { %v209_v12 = vld [vmem:[%s7293_s1 + $0x5a0] sm:$0xff]  ;;  %3227 = vmatpush1.bf16.msra.mxu1 %v4776_v9 }
   0x9   :  { %v69_v13 = vld [vmem:[%s7293_s1 + $0x140] sm:$0xff]  ;;  %v4769_v14 = vcombine.high %v205_v11, %v209_v12  ;;  %3185 = vmatprep.subr.bf16.mxu0 %v4641_v10  ;;  %v4768_v19 = vcombine.low %v205_v11, %v209_v12 }
   0xa   :  { %v73_v15 = vld [vmem:[%s7293_s1 + $0x160] sm:$0xff]  ;;  %3186 = vmatpush1.bf16.msra.mxu0 %v4640_v18 }
   0xb   :  { %v197_v16 = vld [vmem:[%s7293_s1 + $0x540] sm:$0xff]  ;;  %v4633_v20 = vcombine.high %v69_v13, %v73_v15  ;;  %3228 = vmatprep.subr.bf16.mxu1 %v4769_v14  ;;  %v4632_v26 = vcombine.low %v69_v13, %v73_v15 }
   0xc   :  { %v201_v17 = vld [vmem:[%s7293_s1 + $0x560] sm:$0xff]  ;;  %3229 = vmatpush1.bf16.msra.mxu1 %v4768_v19 }
   0xd   :  { %v4761_v21 = vcombine.high %v197_v16, %v201_v17  ;;  %v61_v22 = vld [vmem:[%s7293_s1 + $0x100] sm:$0xff]  ;;  %3187 = vmatprep.subr.bf16.mxu0 %v4633_v20  ;;  %v4760_v27 = vcombine.low %v197_v16, %v201_v17 }
   0xe   :  { %v65_v23 = vld [vmem:[%s7293_s1 + $0x120] sm:$0xff]  ;;  %3188 = vmatpush1.bf16.msra.mxu0 %v4632_v26 }
   0xf   :  { %v189_v24 = vld [vmem:[%s7293_s1 + $0x500] sm:$0xff]  ;;  %v4625_v28 = vcombine.high %v61_v22, %v65_v23  ;;  %3230 = vmatprep.subr.bf16.mxu1 %v4761_v21  ;;  %v4624_v34 = vcombine.low %v61_v22, %v65_v23 }
  0x10   :  { %v193_v25 = vld [vmem:[%s7293_s1 + $0x520] sm:$0xff]  ;;  %3231 = vmatpush1.bf16.msra.mxu1 %v4760_v27 }
  0x11   :  { %v4753_v29 = vcombine.high %v189_v24, %v193_v25  ;;  %v53_v30 = vld [vmem:[%s7293_s1 + $0xc0] sm:$0xff]  ;;  %3189 = vmatprep.subr.bf16.mxu0 %v4625_v28  ;;  %v4752_v35 = vcombine.low %v189_v24, %v193_v25 }
  0x12   :  { %v57_v31 = vld [vmem:[%s7293_s1 + $0xe0] sm:$0xff]  ;;  %3190 = vmatpush1.bf16.msra.mxu0 %v4624_v34 }
  0x13   :  { %v181_v32 = vld [vmem:[%s7293_s1 + $0x4c0] sm:$0xff]  ;;  %v4617_v36 = vcombine.high %v53_v30, %v57_v31  ;;  %3232 = vmatprep.subr.bf16.mxu1 %v4753_v29  ;;  %v4616_v42 = vcombine.low %v53_v30, %v57_v31 }
  0x14   :  { %v185_v33 = vld [vmem:[%s7293_s1 + $0x4e0] sm:$0xff]  ;;  %3233 = vmatpush1.bf16.msra.mxu1 %v4752_v35 }
  0x15   :  { %v4745_v37 = vcombine.high %v181_v32, %v185_v33  ;;  %v45_v38 = vld [vmem:[%s7293_s1 + $0x80] sm:$0xff]  ;;  %3191 = vmatprep.subr.bf16.mxu0 %v4617_v36  ;;  %v4744_v43 = vcombine.low %v181_v32, %v185_v33 }
  0x16   :  { %v49_v39 = vld [vmem:[%s7293_s1 + $0xa0] sm:$0xff]  ;;  %3192 = vmatpush1.bf16.msra.mxu0 %v4616_v42 }
  0x17   :  { %v173_v40 = vld [vmem:[%s7293_s1 + $0x480] sm:$0xff]  ;;  %v4609_v44 = vcombine.high %v45_v38, %v49_v39  ;;  %3234 = vmatprep.subr.bf16.mxu1 %v4745_v37  ;;  %v4608_v50 = vcombine.low %v45_v38, %v49_v39 }
  0x18   :  { %v177_v41 = vld [vmem:[%s7293_s1 + $0x4a0] sm:$0xff]  ;;  %3235 = vmatpush1.bf16.msra.mxu1 %v4744_v43 }
  0x19   :  { %v4737_v45 = vcombine.high %v173_v40, %v177_v41  ;;  %v37_v46 = vld [vmem:[%s7293_s1 + $0x40] sm:$0xff]  ;;  %3193 = vmatprep.subr.bf16.mxu0 %v4609_v44  ;;  %v4736_v51 = vcombine.low %v173_v40, %v177_v41 }
  0x1a   :  { %v41_v47 = vld [vmem:[%s7293_s1 + $0x60] sm:$0xff]  ;;  %3194 = vmatpush1.bf16.msra.mxu0 %v4608_v50 }
  0x1b   :  { %v165_v48 = vld [vmem:[%s7293_s1 + $0x440] sm:$0xff]  ;;  %v4601_v52 = vcombine.high %v37_v46, %v41_v47  ;;  %3236 = vmatprep.subr.bf16.mxu1 %v4737_v45  ;;  %v4600_v0 = vcombine.low %v37_v46, %v41_v47 }
  0x1c   :  { %v169_v49 = vld [vmem:[%s7293_s1 + $0x460] sm:$0xff]  ;;  %3237 = vmatpush1.bf16.msra.mxu1 %v4736_v51 }
  0x1d   :  { %v29_v53 = vld [vmem:[%s7293_s1] sm:$0xff]  ;;  %v4729_v56 = vcombine.high %v165_v48, %v169_v49  ;;  %3195 = vmatprep.subr.bf16.mxu0 %v4601_v52  ;;  %v4728_v1 = vcombine.low %v165_v48, %v169_v49 }
  0x1e   :  { %v5441_v54 = vld [vmem:[%s7294_s0] sm:$0xff]  ;;  %3196 = vmatpush1.bf16.msra.mxu0 %v4600_v0 }
  0x1f   :  { %v5446_v55 = vld [vmem:[%s7294_s0 + $0x20] sm:$0xff]  ;;  %3238 = vmatprep.subr.bf16.mxu1 %v4729_v56 }
  0x20   :  { %v33_v57 = vld [vmem:[%s7293_s1 + $0x20] sm:$0xff]  ;;  %v5453_v58 = vcombine.high %v5441_v54, %v5446_v55  ;;  %3239 = vmatpush1.bf16.msra.mxu1 %v4728_v1 }
  0x21   :  { %v157_v61 = vld [vmem:[%s7293_s1 + $0x400] sm:$0xff]  ;;  %v4593_v2 = vcombine.high %v29_v53, %v33_v57  ;;  %v4592_v8 = vcombine.low %v29_v53, %v33_v57 }
  0x22   :  { %v161_v62 = vld [vmem:[%s7293_s1 + $0x420] sm:$0xff]  ;;  %3215 = vmatprep.mubr.bf16.mxu0 %v5453_v58 }
  0x23   :  { %v4721_v3 = vcombine.high %v157_v61, %v161_v62  ;;  %v149_v4 = vld [vmem:[%s7293_s1 + $0x3c0] sm:$0xff]  ;;  %3197 = vmatprep.subr.bf16.mxu0 %v4593_v2  ;;  %v4720_v9 = vcombine.low %v157_v61, %v161_v62 }
  0x24   :  { %v153_v5 = vld [vmem:[%s7293_s1 + $0x3e0] sm:$0xff]  ;;  %3198 = vmatpush1.bf16.msra.mxu0 %v4592_v8 }
  0x25   :  { %v277_v6 = vld [vmem:[%s7293_s1 + $0x7c0] sm:$0xff]  ;;  %v4713_v10 = vcombine.high %v149_v4, %v153_v5  ;;  %3240 = vmatprep.subr.bf16.mxu1 %v4721_v3  ;;  %v4712_v16 = vcombine.low %v149_v4, %v153_v5 }
  0x26   :  { %v281_v7 = vld [vmem:[%s7293_s1 + $0x7e0] sm:$0xff]  ;;  %3241 = vmatpush1.bf16.msra.mxu1 %v4720_v9 }
  0x27   :  { %v4841_v11 = vcombine.high %v277_v6, %v281_v7  ;;  %v141_v12 = vld [vmem:[%s7293_s1 + $0x380] sm:$0xff]  ;;  %3199 = vmatprep.subr.bf16.mxu0 %v4713_v10  ;;  %v4840_v17 = vcombine.low %v277_v6, %v281_v7 }
  0x28   :  { %v145_v13 = vld [vmem:[%s7293_s1 + $0x3a0] sm:$0xff]  ;;  %3200 = vmatpush2.bf16.msra.mxu0 %v4712_v16 }
  0x29   :  { %v269_v14 = vld [vmem:[%s7293_s1 + $0x780] sm:$0xff]  ;;  %v4705_v18 = vcombine.high %v141_v12, %v145_v13  ;;  %3242 = vmatprep.subr.bf16.mxu1 %v4841_v11  ;;  %v4704_v24 = vcombine.low %v141_v12, %v145_v13 }
  0x2a   :  { %v273_v15 = vld [vmem:[%s7293_s1 + $0x7a0] sm:$0xff]  ;;  %3243 = vmatpush2.bf16.msra.mxu1 %v4840_v17 }
  0x2b   :  { %v4833_v19 = vcombine.high %v269_v14, %v273_v15  ;;  %v133_v20 = vld [vmem:[%s7293_s1 + $0x340] sm:$0xff]  ;;  %3201 = vmatprep.subr.bf16.mxu0 %v4705_v18  ;;  %v4832_v25 = vcombine.low %v269_v14, %v273_v15 }
  0x2c   :  { %v137_v21 = vld [vmem:[%s7293_s1 + $0x360] sm:$0xff]  ;;  %3202 = vmatpush2.bf16.msra.mxu0 %v4704_v24  ;;  %v5609_v24 = vld [vmem:[%s7294_s0 + $0x30] sm:$0xff] }
  0x2d   :  { %v261_v22 = vld [vmem:[%s7293_s1 + $0x740] sm:$0xff]  ;;  %v4697_v26 = vcombine.high %v133_v20, %v137_v21  ;;  %3244 = vmatprep.subr.bf16.mxu1 %v4833_v19  ;;  %v4696_v32 = vcombine.low %v133_v20, %v137_v21  ;;  %v5596_v21 = vcombine.low %v5441_v54, %v5446_v55  ;;  %v5618_v55 = vld [vmem:[%s7294_s0 + $0x18] sm:$0xff] }
  0x2e   :  { %v265_v23 = vld [vmem:[%s7293_s1 + $0x760] sm:$0xff]  ;;  %3245 = vmatpush2.bf16.msra.mxu1 %v4832_v25  ;;  %v5613_v25 = vcombine.low %v5458_v59, %v5463_v60 }
  0x2f   :  { %v4825_v27 = vcombine.high %v261_v22, %v265_v23  ;;  %v125_v28 = vld [vmem:[%s7293_s1 + $0x300] sm:$0xff]  ;;  %3203 = vmatprep.subr.bf16.mxu0 %v4697_v26  ;;  %v4824_v33 = vcombine.low %v261_v22, %v265_v23  ;;  %v5604_v23 = vld [vmem:[%s7294_s0 + $0x10] sm:$0xff]  ;;  %v5623_v26 = vld [vmem:[%s7294_s0 + $0x38] sm:$0xff] }
  0x30   :  { %v129_v29 = vld [vmem:[%s7293_s1 + $0x320] sm:$0xff]  ;;  %3204 = vmatpush2.bf16.msra.mxu0 %v4696_v32 }
  0x31   :  { %v253_v30 = vld [vmem:[%s7293_s1 + $0x700] sm:$0xff]  ;;  %v4689_v34 = vcombine.high %v125_v28, %v129_v29  ;;  %3246 = vmatprep.subr.bf16.mxu1 %v4825_v27  ;;  %v4688_v40 = vcombine.low %v125_v28, %v129_v29 }
  0x32   :  { %v257_v31 = vld [vmem:[%s7293_s1 + $0x720] sm:$0xff]  ;;  %3247 = vmatpush2.bf16.msra.mxu1 %v4824_v33  ;;  %v5644_v33 = vcombine.high %v5618_v55, %v5623_v26 }
  0x33   :  { %v4817_v35 = vcombine.high %v253_v30, %v257_v31  ;;  %v117_v36 = vld [vmem:[%s7293_s1 + $0x2c0] sm:$0xff]  ;;  %3205 = vmatprep.subr.bf16.mxu0 %v4689_v34  ;;  %v4816_v41 = vcombine.low %v253_v30, %v257_v31  ;;  %v5633_v30 = vcombine.high %v5604_v23, %v5609_v24 }
  0x34   :  { %v121_v37 = vld [vmem:[%s7293_s1 + $0x2e0] sm:$0xff]  ;;  %3206 = vmatpush2.bf16.msra.mxu0 %v4688_v40 }
  0x35   :  { %v245_v38 = vld [vmem:[%s7293_s1 + $0x6c0] sm:$0xff]  ;;  %v4681_v42 = vcombine.high %v117_v36, %v121_v37  ;;  %3248 = vmatprep.subr.bf16.mxu1 %v4817_v35  ;;  %v4680_v48 = vcombine.low %v117_v36, %v121_v37 }
  0x36   :  { %v249_v39 = vld [vmem:[%s7293_s1 + $0x6e0] sm:$0xff]  ;;  %3249 = vmatpush2.bf16.msra.mxu1 %v4816_v41 }
  0x37   :  { %v4809_v43 = vcombine.high %v245_v38, %v249_v39  ;;  %v109_v44 = vld [vmem:[%s7293_s1 + $0x280] sm:$0xff]  ;;  %3207 = vmatprep.subr.bf16.mxu0 %v4681_v42  ;;  %v4808_v49 = vcombine.low %v245_v38, %v249_v39 }
  0x38   :  { %v113_v45 = vld [vmem:[%s7293_s1 + $0x2a0] sm:$0xff]  ;;  %3208 = vmatpush2.bf16.msra.mxu0 %v4680_v48 }
  0x39   :  { %v237_v46 = vld [vmem:[%s7293_s1 + $0x680] sm:$0xff]  ;;  %v4673_v50 = vcombine.high %v109_v44, %v113_v45  ;;  %3250 = vmatprep.subr.bf16.mxu1 %v4809_v43  ;;  %v4672_v61 = vcombine.low %v109_v44, %v113_v45 }
  0x3a   :  { %v241_v47 = vld [vmem:[%s7293_s1 + $0x6a0] sm:$0xff]  ;;  %3251 = vmatpush2.bf16.msra.mxu1 %v4808_v49 }
  0x3b   :  { %v4801_v51 = vcombine.high %v237_v46, %v241_v47  ;;  %v101_v52 = vld [vmem:[%s7293_s1 + $0x240] sm:$0xff]  ;;  %3209 = vmatprep.subr.bf16.mxu0 %v4673_v50  ;;  %v4800_v62 = vcombine.low %v237_v46, %v241_v47 }
  0x3c   :  { %v105_v53 = vld [vmem:[%s7293_s1 + $0x260] sm:$0xff]  ;;  %3210 = vmatpush2.bf16.msra.mxu0 %v4672_v61 }
  0x3d   :  { %v229_v56 = vld [vmem:[%s7293_s1 + $0x640] sm:$0xff]  ;;  %v4665_v0 = vcombine.high %v101_v52, %v105_v53  ;;  %3252 = vmatprep.subr.bf16.mxu1 %v4801_v51  ;;  %v4664_v6 = vcombine.low %v101_v52, %v105_v53 }
  0x3e   :  { %v233_v57 = vld [vmem:[%s7293_s1 + $0x660] sm:$0xff]  ;;  %3253 = vmatpush2.bf16.msra.mxu1 %v4800_v62 }
  0x3f   :  { %v4793_v1 = vcombine.high %v229_v56, %v233_v57  ;;  %v93_v2 = vld [vmem:[%s7293_s1 + $0x200] sm:$0xff]  ;;  %3211 = vmatprep.subr.bf16.mxu0 %v4665_v0  ;;  %v4792_v7 = vcombine.low %v229_v56, %v233_v57 }
  0x40   :  { %v97_v3 = vld [vmem:[%s7293_s1 + $0x220] sm:$0xff]  ;;  %3212 = vmatpush2.bf16.msra.mxu0 %v4664_v6 }
  0x41   :  { %v221_v4 = vld [vmem:[%s7293_s1 + $0x600] sm:$0xff]  ;;  %v4657_v8 = vcombine.high %v93_v2, %v97_v3  ;;  %3254 = vmatprep.subr.bf16.mxu1 %v4793_v1  ;;  %v4656_v14 = vcombine.low %v93_v2, %v97_v3 }
  0x42   :  { %v225_v5 = vld [vmem:[%s7293_s1 + $0x620] sm:$0xff]  ;;  %3255 = vmatpush2.bf16.msra.mxu1 %v4792_v7 }
  0x43   :  { %v4785_v9 = vcombine.high %v221_v4, %v225_v5  ;;  %v341_v10 = vld [vmem:[%s7293_s1 + $0x9c0] sm:$0xff]  ;;  %3213 = vmatprep.subr.bf16.mxu0 %v4657_v8  ;;  %v4784_v15 = vcombine.low %v221_v4, %v225_v5 }
  0x44   :  { %v345_v11 = vld [vmem:[%s7293_s1 + $0x9e0] sm:$0xff]  ;;  %3214 = vmatpush2.bf16.msra.mxu0 %v4656_v14 }
  0x45   :  { %v469_v12 = vld [vmem:[%s7293_s1 + $0xdc0] sm:$0xff]  ;;  %v4905_v16 = vcombine.high %v341_v10, %v345_v11  ;;  %3256 = vmatprep.subr.bf16.mxu1 %v4785_v9  ;;  %v4904_v54 = vcombine.low %v341_v10, %v345_v11 }
  0x46   :  { %v473_v13 = vld [vmem:[%s7293_s1 + $0xde0] sm:$0xff]  ;;  %3257 = vmatpush2.bf16.msra.mxu1 %v4784_v15 }
  0x47   :  { %v5033_v17 = vcombine.high %v469_v12, %v473_v13  ;;  %v333_v18 = vld [vmem:[%s7293_s1 + $0x980] sm:$0xff]  ;;  %3269 = vmatprep.subr.bf16.mxu0 %v4905_v16  ;;  %v5032_v27 = vcombine.low %v469_v12, %v473_v13  ;;  %3216 = vmatmul.mubr.bf16.vlgmr.msra.gmra.mxu0 %v5596_v21 }
  0x48   :  { %v337_v19 = vld [vmem:[%s7293_s1 + $0x9a0] sm:$0xff]  ;;  %3270 = vmatpush1.bf16.msra.mxu0 %v4904_v54  ;;  %3301 = vmatprep.mubr.bf16.mxu0 %v5633_v30 }
  0x49   :  { %v461_v20 = vld [vmem:[%s7293_s1 + $0xd80] sm:$0xff]  ;;  %v4897_v28 = vcombine.high %v333_v18, %v337_v19  ;;  %3312 = vmatprep.subr.bf16.mxu1 %v5033_v17  ;;  %3259 = vmatmul.mubr.bf16.vlgmr.msra.gmra.mxu1 %v5613_v25  ;;  %v4896_v34 = vcombine.low %v333_v18, %v337_v19 }
  0x4a   :  { %v465_v22 = vld [vmem:[%s7293_s1 + $0xda0] sm:$0xff]  ;;  %3313 = vmatpush1.bf16.msra.mxu1 %v5032_v27  ;;  %3344 = vmatprep.mubr.bf16.mxu1 %v5644_v33 }
  0x4b   :  { %v5025_v29 = vcombine.high %v461_v20, %v465_v22  ;;  %v325_v59 = vld [vmem:[%s7293_s1 + $0x940] sm:$0xff]  ;;  %3271 = vmatprep.subr.bf16.mxu0 %v4897_v28  ;;  %v5024_v35 = vcombine.low %v461_v20, %v465_v22 }
  0x4c   :  { %v329_v60 = vld [vmem:[%s7293_s1 + $0x960] sm:$0xff]  ;;  %3272 = vmatpush1.bf16.msra.mxu0 %v4896_v34 }
  0x4d   :  { %v453_v31 = vld [vmem:[%s7293_s1 + $0xd40] sm:$0xff]  ;;  %v4889_v36 = vcombine.high %v325_v59, %v329_v60  ;;  %3314 = vmatprep.subr.bf16.mxu1 %v5025_v29  ;;  %v4888_v42 = vcombine.low %v325_v59, %v329_v60 }
  0x4e   :  { %v457_v32 = vld [vmem:[%s7293_s1 + $0xd60] sm:$0xff]  ;;  %3315 = vmatpush1.bf16.msra.mxu1 %v5024_v35 }
  0x4f   :  { %v5017_v37 = vcombine.high %v453_v31, %v457_v32  ;;  %v317_v38 = vld [vmem:[%s7293_s1 + $0x900] sm:$0xff]  ;;  %3273 = vmatprep.subr.bf16.mxu0 %v4889_v36  ;;  %v5016_v43 = vcombine.low %v453_v31, %v457_v32 }
  0x50   :  { %v321_v39 = vld [vmem:[%s7293_s1 + $0x920] sm:$0xff]  ;;  %3274 = vmatpush1.bf16.msra.mxu0 %v4888_v42 }
  0x51   :  { %v445_v40 = vld [vmem:[%s7293_s1 + $0xd00] sm:$0xff]  ;;  %v4881_v44 = vcombine.high %v317_v38, %v321_v39  ;;  %3316 = vmatprep.subr.bf16.mxu1 %v5017_v37  ;;  %v4880_v50 = vcombine.low %v317_v38, %v321_v39 }
  0x52   :  { %v449_v41 = vld [vmem:[%s7293_s1 + $0xd20] sm:$0xff]  ;;  %3317 = vmatpush1.bf16.msra.mxu1 %v5016_v43 }
  0x53   :  { %v5009_v45 = vcombine.high %v445_v40, %v449_v41  ;;  %v309_v46 = vld [vmem:[%s7293_s1 + $0x8c0] sm:$0xff]  ;;  %3275 = vmatprep.subr.bf16.mxu0 %v4881_v44  ;;  %v5008_v51 = vcombine.low %v445_v40, %v449_v41 }
  0x54   :  { %v313_v47 = vld [vmem:[%s7293_s1 + $0x8e0] sm:$0xff]  ;;  %3276 = vmatpush1.bf16.msra.mxu0 %v4880_v50 }
  0x55   :  { %v437_v48 = vld [vmem:[%s7293_s1 + $0xcc0] sm:$0xff]  ;;  %v4873_v52 = vcombine.high %v309_v46, %v313_v47  ;;  %3318 = vmatprep.subr.bf16.mxu1 %v5009_v45  ;;  %v4872_v0 = vcombine.low %v309_v46, %v313_v47 }
  0x56   :  { %v441_v49 = vld [vmem:[%s7293_s1 + $0xce0] sm:$0xff]  ;;  %3319 = vmatpush1.bf16.msra.mxu1 %v5008_v51 }
  0x57   :  { %v5001_v53 = vcombine.high %v437_v48, %v441_v49  ;;  %v301_v56 = vld [vmem:[%s7293_s1 + $0x880] sm:$0xff]  ;;  %3277 = vmatprep.subr.bf16.mxu0 %v4873_v52  ;;  %v5000_v1 = vcombine.low %v437_v48, %v441_v49 }
  0x58   :  { %v305_v57 = vld [vmem:[%s7293_s1 + $0x8a0] sm:$0xff]  ;;  %3278 = vmatpush1.bf16.msra.mxu0 %v4872_v0 }
  0x59   :  { %v429_v61 = vld [vmem:[%s7293_s1 + $0xc80] sm:$0xff]  ;;  %v4865_v2 = vcombine.high %v301_v56, %v305_v57  ;;  %3320 = vmatprep.subr.bf16.mxu1 %v5001_v53  ;;  %v4864_v8 = vcombine.low %v301_v56, %v305_v57 }
  0x5a   :  { %v433_v62 = vld [vmem:[%s7293_s1 + $0xca0] sm:$0xff]  ;;  %3321 = vmatpush1.bf16.msra.mxu1 %v5000_v1 }
  0x5b   :  { %v4993_v3 = vcombine.high %v429_v61, %v433_v62  ;;  %v293_v4 = vld [vmem:[%s7293_s1 + $0x840] sm:$0xff]  ;;  %3279 = vmatprep.subr.bf16.mxu0 %v4865_v2  ;;  %v4992_v9 = vcombine.low %v429_v61, %v433_v62 }
  0x5c   :  { %v297_v5 = vld [vmem:[%s7293_s1 + $0x860] sm:$0xff]  ;;  %3280 = vmatpush1.bf16.msra.mxu0 %v4864_v8 }
  0x5d   :  { %v421_v6 = vld [vmem:[%s7293_s1 + $0xc40] sm:$0xff]  ;;  %v4857_v10 = vcombine.high %v293_v4, %v297_v5  ;;  %3322 = vmatprep.subr.bf16.mxu1 %v4993_v3  ;;  %v4856_v16 = vcombine.low %v293_v4, %v297_v5 }
  0x5e   :  { %v425_v7 = vld [vmem:[%s7293_s1 + $0xc60] sm:$0xff]  ;;  %3323 = vmatpush1.bf16.msra.mxu1 %v4992_v9 }
  0x5f   :  { %v4985_v11 = vcombine.high %v421_v6, %v425_v7  ;;  %v285_v12 = vld [vmem:[%s7293_s1 + $0x800] sm:$0xff]  ;;  %3281 = vmatprep.subr.bf16.mxu0 %v4857_v10  ;;  %v4984_v17 = vcombine.low %v421_v6, %v425_v7 }
  0x60   :  { %v289_v13 = vld [vmem:[%s7293_s1 + $0x820] sm:$0xff]  ;;  %3282 = vmatpush1.bf16.msra.mxu0 %v4856_v16 }
  0x61   :  { %v413_v14 = vld [vmem:[%s7293_s1 + $0xc00] sm:$0xff]  ;;  %v4849_v18 = vcombine.high %v285_v12, %v289_v13  ;;  %3324 = vmatprep.subr.bf16.mxu1 %v4985_v11  ;;  %v4848_v28 = vcombine.low %v285_v12, %v289_v13 }
  0x62   :  { %v417_v15 = vld [vmem:[%s7293_s1 + $0xc20] sm:$0xff]  ;;  %3325 = vmatpush1.bf16.msra.mxu1 %v4984_v17 }
  0x63   :  { %v4977_v19 = vcombine.high %v413_v14, %v417_v15  ;;  %v405_v20 = vld [vmem:[%s7293_s1 + $0xbc0] sm:$0xff]  ;;  %3283 = vmatprep.subr.bf16.mxu0 %v4849_v18  ;;  %v4976_v29 = vcombine.low %v413_v14, %v417_v15 }
  0x64   :  { %v409_v22 = vld [vmem:[%s7293_s1 + $0xbe0] sm:$0xff]  ;;  %3284 = vmatpush1.bf16.msra.mxu0 %v4848_v28 }
  0x65   :  { %v533_v54 = vld [vmem:[%s7293_s1 + $0xfc0] sm:$0xff]  ;;  %v4969_v59 = vcombine.high %v405_v20, %v409_v22  ;;  %3326 = vmatprep.subr.bf16.mxu1 %v4977_v19  ;;  %v4968_v36 = vcombine.low %v405_v20, %v409_v22 }
  0x66   :  { %v537_v27 = vld [vmem:[%s7293_s1 + $0xfe0] sm:$0xff]  ;;  %3327 = vmatpush1.bf16.msra.mxu1 %v4976_v29 }
  0x67   :  { %v5097_v60 = vcombine.high %v533_v54, %v537_v27  ;;  %v397_v31 = vld [vmem:[%s7293_s1 + $0xb80] sm:$0xff]  ;;  %3285 = vmatprep.subr.bf16.mxu0 %v4969_v59  ;;  %v5096_v37 = vcombine.low %v533_v54, %v537_v27 }
  0x68   :  { %v401_v32 = vld [vmem:[%s7293_s1 + $0xba0] sm:$0xff]  ;;  %3286 = vmatpush2.bf16.msra.mxu0 %v4968_v36  ;;  %v214_v36 = vld [vmem:[%s7293_s1 + $0x5c8] sm:$0xff] }
  0x69   :  { %v525_v34 = vld [vmem:[%s7293_s1 + $0xf80] sm:$0xff]  ;;  %v4961_v38 = vcombine.high %v397_v31, %v401_v32  ;;  %3328 = vmatprep.subr.bf16.mxu1 %v5097_v60  ;;  %v4960_v44 = vcombine.low %v397_v31, %v401_v32 }
  0x6a   :  { %v529_v35 = vld [vmem:[%s7293_s1 + $0xfa0] sm:$0xff]  ;;  %3329 = vmatpush2.bf16.msra.mxu1 %v5096_v37  ;;  %v218_v37 = vld [vmem:[%s7293_s1 + $0x5e8] sm:$0xff] }
  0x6b   :  { %v5089_v39 = vcombine.high %v525_v34, %v529_v35  ;;  %v389_v40 = vld [vmem:[%s7293_s1 + $0xb40] sm:$0xff]  ;;  %3287 = vmatprep.subr.bf16.mxu0 %v4961_v38  ;;  %v5088_v45 = vcombine.low %v525_v34, %v529_v35  ;;  %v86_v34 = vld [vmem:[%s7293_s1 + $0x1c8] sm:$0xff] }
  0x6c   :  { %v393_v41 = vld [vmem:[%s7293_s1 + $0xb60] sm:$0xff]  ;;  %3288 = vmatpush2.bf16.msra.mxu0 %v4960_v44  ;;  %v90_v35 = vld [vmem:[%s7293_s1 + $0x1e8] sm:$0xff]  ;;  %v5825_v44 = vcombine.low %v5604_v23, %v5609_v24 }
  0x6d   :  { %v517_v42 = vld [vmem:[%s7293_s1 + $0xf40] sm:$0xff]  ;;  %v4953_v46 = vcombine.high %v389_v40, %v393_v41  ;;  %3330 = vmatprep.subr.bf16.mxu1 %v5089_v39  ;;  %v4952_v52 = vcombine.low %v389_v40, %v393_v41  ;;  %v4651_v40 = vcombine.high %v86_v34, %v90_v35  ;;  %v4779_v41 = vcombine.high %v214_v36, %v218_v37  ;;  %v70_v24 = vld [vmem:[%s7293_s1 + $0x148] sm:$0xff] }
  0x6e   :  { %v521_v43 = vld [vmem:[%s7293_s1 + $0xf60] sm:$0xff]  ;;  %3331 = vmatpush2.bf16.msra.mxu1 %v5088_v45  ;;  %v206_v45 = vld [vmem:[%s7293_s1 + $0x588] sm:$0xff] }
  0x6f   :  { %v5081_v47 = vcombine.high %v517_v42, %v521_v43  ;;  %v381_v48 = vld [vmem:[%s7293_s1 + $0xb00] sm:$0xff]  ;;  %3289 = vmatprep.subr.bf16.mxu0 %v4953_v46  ;;  %v5080_v53 = vcombine.low %v517_v42, %v521_v43  ;;  %v78_v42 = vld [vmem:[%s7293_s1 + $0x188] sm:$0xff] }
  0x70   :  { %v385_v49 = vld [vmem:[%s7293_s1 + $0xb20] sm:$0xff]  ;;  %3290 = vmatpush2.bf16.msra.mxu0 %v4952_v52  ;;  %v82_v43 = vld [vmem:[%s7293_s1 + $0x1a8] sm:$0xff] }
  0x71   :  { %v509_v50 = vld [vmem:[%s7293_s1 + $0xf00] sm:$0xff]  ;;  %v4945_v56 = vcombine.high %v381_v48, %v385_v49  ;;  %3332 = vmatprep.subr.bf16.mxu1 %v5081_v47  ;;  %v4944_v2 = vcombine.low %v381_v48, %v385_v49  ;;  %v210_v46 = vld [vmem:[%s7293_s1 + $0x5a8] sm:$0xff]  ;;  %v5835_v47 = vcombine.low %v5618_v55, %v5623_v26  ;;  %v4650_v48 = vcombine.low %v86_v34, %v90_v35 }
  0x72   :  { %v513_v51 = vld [vmem:[%s7293_s1 + $0xf20] sm:$0xff]  ;;  %3333 = vmatpush2.bf16.msra.mxu1 %v5080_v53  ;;  %v4778_v49 = vcombine.low %v214_v36, %v218_v37  ;;  %v4771_v23 = vcombine.high %v206_v45, %v210_v46  ;;  %v198_v55 = vld [vmem:[%s7293_s1 + $0x548] sm:$0xff]  ;;  %v4642_v52 = vcombine.low %v78_v42, %v82_v43  ;;  %v4770_v53 = vcombine.low %v206_v45, %v210_v46 }
  0x73   :  { %v5073_v57 = vcombine.high %v509_v50, %v513_v51  ;;  %v373_v61 = vld [vmem:[%s7293_s1 + $0xac0] sm:$0xff]  ;;  %3291 = vmatprep.subr.bf16.mxu0 %v4945_v56  ;;  %v5072_v3 = vcombine.low %v509_v50, %v513_v51  ;;  %v4643_v50 = vcombine.high %v78_v42, %v82_v43  ;;  %v74_v51 = vld [vmem:[%s7293_s1 + $0x168] sm:$0xff] }
  0x74   :  { %v377_v62 = vld [vmem:[%s7293_s1 + $0xae0] sm:$0xff]  ;;  %3292 = vmatpush2.bf16.msra.mxu0 %v4944_v2  ;;  %v202_v26 = vld [vmem:[%s7293_s1 + $0x568] sm:$0xff]  ;;  %v4635_v56 = vcombine.high %v70_v24, %v74_v51  ;;  %v4634_v2 = vcombine.low %v70_v24, %v74_v51 }
  0x75   :  { %v501_v0 = vld [vmem:[%s7293_s1 + $0xec0] sm:$0xff]  ;;  %v4937_v4 = vcombine.high %v373_v61, %v377_v62  ;;  %3334 = vmatprep.subr.bf16.mxu1 %v5073_v57  ;;  %v4936_v10 = vcombine.low %v373_v61, %v377_v62  ;;  %v4763_v57 = vcombine.high %v198_v55, %v202_v26  ;;  %v62_v61 = vld [vmem:[%s7293_s1 + $0x108] sm:$0xff] }
  0x76   :  { %v505_v1 = vld [vmem:[%s7293_s1 + $0xee0] sm:$0xff]  ;;  %3335 = vmatpush2.bf16.msra.mxu1 %v5072_v3  ;;  %v66_v62 = vld [vmem:[%s7293_s1 + $0x128] sm:$0xff]  ;;  %v4762_v3 = vcombine.low %v198_v55, %v202_v26 }
  0x77   :  { %v5065_v5 = vcombine.high %v501_v0, %v505_v1  ;;  %v365_v6 = vld [vmem:[%s7293_s1 + $0xa80] sm:$0xff]  ;;  %3293 = vmatprep.subr.bf16.mxu0 %v4937_v4  ;;  %v5064_v11 = vcombine.low %v501_v0, %v505_v1  ;;  %v190_v0 = vld [vmem:[%s7293_s1 + $0x508] sm:$0xff]  ;;  %v4627_v4 = vcombine.high %v62_v61, %v66_v62 }
  0x78   :  { %v369_v7 = vld [vmem:[%s7293_s1 + $0xaa0] sm:$0xff]  ;;  %3294 = vmatpush2.bf16.msra.mxu0 %v4936_v10  ;;  %v194_v1 = vld [vmem:[%s7293_s1 + $0x528] sm:$0xff]  ;;  %v4626_v10 = vcombine.low %v62_v61, %v66_v62 }
  0x79   :  { %v493_v8 = vld [vmem:[%s7293_s1 + $0xe80] sm:$0xff]  ;;  %v4929_v12 = vcombine.high %v365_v6, %v369_v7  ;;  %3336 = vmatprep.subr.bf16.mxu1 %v5065_v5  ;;  %v4928_v18 = vcombine.low %v365_v6, %v369_v7  ;;  %v4755_v5 = vcombine.high %v190_v0, %v194_v1  ;;  %v54_v6 = vld [vmem:[%s7293_s1 + $0xc8] sm:$0xff] }
  0x7a   :  { %v497_v9 = vld [vmem:[%s7293_s1 + $0xea0] sm:$0xff]  ;;  %3337 = vmatpush2.bf16.msra.mxu1 %v5064_v11  ;;  %v58_v7 = vld [vmem:[%s7293_s1 + $0xe8] sm:$0xff]  ;;  %v4754_v11 = vcombine.low %v190_v0, %v194_v1 }
  0x7b   :  { %v5057_v13 = vcombine.high %v493_v8, %v497_v9  ;;  %v357_v14 = vld [vmem:[%s7293_s1 + $0xa40] sm:$0xff]  ;;  %3295 = vmatprep.subr.bf16.mxu0 %v4929_v12  ;;  %v5056_v19 = vcombine.low %v493_v8, %v497_v9  ;;  %v182_v8 = vld [vmem:[%s7293_s1 + $0x4c8] sm:$0xff]  ;;  %v4619_v12 = vcombine.high %v54_v6, %v58_v7 }
  0x7c   :  { %v361_v15 = vld [vmem:[%s7293_s1 + $0xa60] sm:$0xff]  ;;  %3296 = vmatpush2.bf16.msra.mxu0 %v4928_v18  ;;  %v186_v9 = vld [vmem:[%s7293_s1 + $0x4e8] sm:$0xff]  ;;  %v4618_v18 = vcombine.low %v54_v6, %v58_v7 }
  0x7d   :  { %v485_v16 = vld [vmem:[%s7293_s1 + $0xe40] sm:$0xff]  ;;  %v4921_v20 = vcombine.high %v357_v14, %v361_v15  ;;  %3338 = vmatprep.subr.bf16.mxu1 %v5057_v13  ;;  %v4920_v59 = vcombine.low %v357_v14, %v361_v15  ;;  %v4747_v13 = vcombine.high %v182_v8, %v186_v9  ;;  %v46_v14 = vld [vmem:[%s7293_s1 + $0x88] sm:$0xff] }
  0x7e   :  { %v489_v17 = vld [vmem:[%s7293_s1 + $0xe60] sm:$0xff]  ;;  %3339 = vmatpush2.bf16.msra.mxu1 %v5056_v19  ;;  %v50_v15 = vld [vmem:[%s7293_s1 + $0xa8] sm:$0xff]  ;;  %v4746_v19 = vcombine.low %v182_v8, %v186_v9 }
  0x7f   :  { %v5049_v22 = vcombine.high %v485_v16, %v489_v17  ;;  %v349_v54 = vld [vmem:[%s7293_s1 + $0xa00] sm:$0xff]  ;;  %3297 = vmatprep.subr.bf16.mxu0 %v4921_v20  ;;  %v5048_v60 = vcombine.low %v485_v16, %v489_v17  ;;  %v174_v16 = vld [vmem:[%s7293_s1 + $0x488] sm:$0xff]  ;;  %v4611_v20 = vcombine.high %v46_v14, %v50_v15 }
  0x80   :  { %v353_v27 = vld [vmem:[%s7293_s1 + $0xa20] sm:$0xff]  ;;  %3298 = vmatpush2.bf16.msra.mxu0 %v4920_v59  ;;  %v178_v17 = vld [vmem:[%s7293_s1 + $0x4a8] sm:$0xff]  ;;  %v4610_v59 = vcombine.low %v46_v14, %v50_v15 }
  0x81   :  { %v477_v28 = vld [vmem:[%s7293_s1 + $0xe00] sm:$0xff]  ;;  %v4913_v31 = vcombine.high %v349_v54, %v353_v27  ;;  %3340 = vmatprep.subr.bf16.mxu1 %v5049_v22  ;;  %v4912_v38 = vcombine.low %v349_v54, %v353_v27  ;;  %v4739_v22 = vcombine.high %v174_v16, %v178_v17  ;;  %v38_v54 = vld [vmem:[%s7293_s1 + $0x48] sm:$0xff] }
  0x82   :  { %v481_v29 = vld [vmem:[%s7293_s1 + $0xe20] sm:$0xff]  ;;  %3341 = vmatpush2.bf16.msra.mxu1 %v5048_v60  ;;  %v42_v27 = vld [vmem:[%s7293_s1 + $0x68] sm:$0xff]  ;;  %v4738_v60 = vcombine.low %v174_v16, %v178_v17 }
  0x83   :  { %v5041_v32 = vcombine.high %v477_v28, %v481_v29  ;;  %3299 = vmatprep.subr.bf16.mxu0 %v4913_v31  ;;  %v5040_v39 = vcombine.low %v477_v28, %v481_v29  ;;  %v166_v28 = vld [vmem:[%s7293_s1 + $0x448] sm:$0xff]  ;;  %v4603_v31 = vcombine.high %v38_v54, %v42_v27 }
  0x84   :  { %3300 = vmatpush2.bf16.msra.mxu0 %v4912_v38  ;;  %v170_v29 = vld [vmem:[%s7293_s1 + $0x468] sm:$0xff]  ;;  %v4602_v38 = vcombine.low %v38_v54, %v42_v27 }
  0x85   :  { %3342 = vmatprep.subr.bf16.mxu1 %v5041_v32  ;;  %3355 = vmatprep.subr.bf16.mxu0 %v4651_v40  ;;  %v4731_v32 = vcombine.high %v166_v28, %v170_v29  ;;  %v30_v34 = vld [vmem:[%s7293_s1 + $0x8] sm:$0xff] }
  0x86   :  { %3343 = vmatpush2.bf16.msra.mxu1 %v5040_v39  ;;  %v34_v35 = vld [vmem:[%s7293_s1 + $0x28] sm:$0xff]  ;;  %v4730_v39 = vcombine.low %v166_v28, %v170_v29 }
  0x87   :  { %3398 = vmatprep.subr.bf16.mxu1 %v4779_v41  ;;  %3302 = vmatmul.mubr.bf16.vlgmr.msra.gmra.mxu0 %v5825_v44  ;;  %v158_v36 = vld [vmem:[%s7293_s1 + $0x408] sm:$0xff]  ;;  %v4595_v40 = vcombine.high %v30_v34, %v34_v35 }
  0x88   :  { %3356 = vmatpush1.bf16.msra.mxu0 %v4650_v48  ;;  %3387 = vmatprep.mubr.bf16.mxu0 %v5453_v58  ;;  %v162_v37 = vld [vmem:[%s7293_s1 + $0x428] sm:$0xff]  ;;  %v4594_v48 = vcombine.low %v30_v34, %v34_v35 }
  0x89   :  { %3345 = vmatmul.mubr.bf16.vlgmr.msra.gmra.mxu1 %v5835_v47  ;;  %3357 = vmatprep.subr.bf16.mxu0 %v4643_v50  ;;  %v4723_v41 = vcombine.high %v158_v36, %v162_v37  ;;  %v150_v42 = vld [vmem:[%s7293_s1 + $0x3c8] sm:$0xff] }
  0x8a   :  { %3399 = vmatpush1.bf16.msra.mxu1 %v4778_v49  ;;  %3430 = vmatprep.mubr.bf16.mxu1 %v5473_v63  ;;  %v154_v43 = vld [vmem:[%s7293_s1 + $0x3e8] sm:$0xff]  ;;  %v4722_v49 = vcombine.low %v158_v36, %v162_v37 }
  0x8b   :  { %3400 = vmatprep.subr.bf16.mxu1 %v4771_v23  ;;  %v278_v45 = vld [vmem:[%s7293_s1 + $0x7c8] sm:$0xff]  ;;  %v4715_v50 = vcombine.high %v150_v42, %v154_v43 }
  0x8c   :  { %3358 = vmatpush1.bf16.msra.mxu0 %v4642_v52  ;;  %v282_v46 = vld [vmem:[%s7293_s1 + $0x7e8] sm:$0xff]  ;;  %v4714_v52 = vcombine.low %v150_v42, %v154_v43 }
  0x8d   :  { %3359 = vmatprep.subr.bf16.mxu0 %v4635_v56  ;;  %v4843_v23 = vcombine.high %v278_v45, %v282_v46  ;;  %v142_v24 = vld [vmem:[%s7293_s1 + $0x388] sm:$0xff] }
  0x8e   :  { %3401 = vmatpush1.bf16.msra.mxu1 %v4770_v53  ;;  %v146_v51 = vld [vmem:[%s7293_s1 + $0x3a8] sm:$0xff]  ;;  %v4842_v53 = vcombine.low %v278_v45, %v282_v46 }
  0x8f   :  { %3402 = vmatprep.subr.bf16.mxu1 %v4763_v57  ;;  %v270_v55 = vld [vmem:[%s7293_s1 + $0x788] sm:$0xff]  ;;  %v4707_v56 = vcombine.high %v142_v24, %v146_v51 }
  0x90   :  { %3360 = vmatpush1.bf16.msra.mxu0 %v4634_v2  ;;  %v274_v26 = vld [vmem:[%s7293_s1 + $0x7a8] sm:$0xff]  ;;  %v4706_v2 = vcombine.low %v142_v24, %v146_v51 }
  0x91   :  { %3361 = vmatprep.subr.bf16.mxu0 %v4627_v4  ;;  %v4835_v57 = vcombine.high %v270_v55, %v274_v26  ;;  %v134_v61 = vld [vmem:[%s7293_s1 + $0x348] sm:$0xff] }
  0x92   :  { %3403 = vmatpush1.bf16.msra.mxu1 %v4762_v3  ;;  %v138_v62 = vld [vmem:[%s7293_s1 + $0x368] sm:$0xff]  ;;  %v4834_v3 = vcombine.low %v270_v55, %v274_v26 }
  0x93   :  { %3404 = vmatprep.subr.bf16.mxu1 %v4755_v5  ;;  %v262_v0 = vld [vmem:[%s7293_s1 + $0x748] sm:$0xff]  ;;  %v4699_v4 = vcombine.high %v134_v61, %v138_v62 }
  0x94   :  { %3362 = vmatpush1.bf16.msra.mxu0 %v4626_v10  ;;  %v266_v1 = vld [vmem:[%s7293_s1 + $0x768] sm:$0xff]  ;;  %v4698_v10 = vcombine.low %v134_v61, %v138_v62 }
  0x95   :  { %3363 = vmatprep.subr.bf16.mxu0 %v4619_v12  ;;  %v4827_v5 = vcombine.high %v262_v0, %v266_v1  ;;  %v126_v6 = vld [vmem:[%s7293_s1 + $0x308] sm:$0xff] }
  0x96   :  { %3405 = vmatpush1.bf16.msra.mxu1 %v4754_v11  ;;  %v130_v7 = vld [vmem:[%s7293_s1 + $0x328] sm:$0xff]  ;;  %v4826_v11 = vcombine.low %v262_v0, %v266_v1 }
  0x97   :  { %3406 = vmatprep.subr.bf16.mxu1 %v4747_v13  ;;  %v254_v8 = vld [vmem:[%s7293_s1 + $0x708] sm:$0xff]  ;;  %v4691_v12 = vcombine.high %v126_v6, %v130_v7 }
  0x98   :  { %3364 = vmatpush1.bf16.msra.mxu0 %v4618_v18  ;;  %v258_v9 = vld [vmem:[%s7293_s1 + $0x728] sm:$0xff]  ;;  %v4690_v18 = vcombine.low %v126_v6, %v130_v7 }
  0x99   :  { %3365 = vmatprep.subr.bf16.mxu0 %v4611_v20  ;;  %v4819_v13 = vcombine.high %v254_v8, %v258_v9  ;;  %v118_v14 = vld [vmem:[%s7293_s1 + $0x2c8] sm:$0xff] }
  0x9a   :  { %3407 = vmatpush1.bf16.msra.mxu1 %v4746_v19  ;;  %v122_v15 = vld [vmem:[%s7293_s1 + $0x2e8] sm:$0xff]  ;;  %v4818_v19 = vcombine.low %v254_v8, %v258_v9 }
  0x9b   :  { %3408 = vmatprep.subr.bf16.mxu1 %v4739_v22  ;;  %v246_v16 = vld [vmem:[%s7293_s1 + $0x6c8] sm:$0xff]  ;;  %v4683_v20 = vcombine.high %v118_v14, %v122_v15 }
  0x9c   :  { %3366 = vmatpush1.bf16.msra.mxu0 %v4610_v59  ;;  %v250_v17 = vld [vmem:[%s7293_s1 + $0x6e8] sm:$0xff]  ;;  %v4682_v59 = vcombine.low %v118_v14, %v122_v15 }
  0x9d   :  { %3367 = vmatprep.subr.bf16.mxu0 %v4603_v31  ;;  %v4811_v22 = vcombine.high %v246_v16, %v250_v17  ;;  %v110_v54 = vld [vmem:[%s7293_s1 + $0x288] sm:$0xff] }
  0x9e   :  { %3409 = vmatpush1.bf16.msra.mxu1 %v4738_v60  ;;  %v114_v27 = vld [vmem:[%s7293_s1 + $0x2a8] sm:$0xff]  ;;  %v4810_v60 = vcombine.low %v246_v16, %v250_v17 }
  0x9f   :  { %3410 = vmatprep.subr.bf16.mxu1 %v4731_v32  ;;  %v238_v28 = vld [vmem:[%s7293_s1 + $0x688] sm:$0xff]  ;;  %v4675_v31 = vcombine.high %v110_v54, %v114_v27 }
  0xa0   :  { %3368 = vmatpush1.bf16.msra.mxu0 %v4602_v38  ;;  %v242_v29 = vld [vmem:[%s7293_s1 + $0x6a8] sm:$0xff]  ;;  %v4674_v38 = vcombine.low %v110_v54, %v114_v27 }
  0xa1   :  { %3369 = vmatprep.subr.bf16.mxu0 %v4595_v40  ;;  %v4803_v32 = vcombine.high %v238_v28, %v242_v29  ;;  %v102_v34 = vld [vmem:[%s7293_s1 + $0x248] sm:$0xff] }
  0xa2   :  { %3411 = vmatpush1.bf16.msra.mxu1 %v4730_v39  ;;  %v106_v35 = vld [vmem:[%s7293_s1 + $0x268] sm:$0xff]  ;;  %v4802_v39 = vcombine.low %v238_v28, %v242_v29 }
  0xa3   :  { %3412 = vmatprep.subr.bf16.mxu1 %v4723_v41  ;;  %v230_v36 = vld [vmem:[%s7293_s1 + $0x648] sm:$0xff]  ;;  %v4667_v40 = vcombine.high %v102_v34, %v106_v35 }
  0xa4   :  { %3370 = vmatpush1.bf16.msra.mxu0 %v4594_v48  ;;  %v234_v37 = vld [vmem:[%s7293_s1 + $0x668] sm:$0xff]  ;;  %v4666_v48 = vcombine.low %v102_v34, %v106_v35 }
  0xa5   :  { %3371 = vmatprep.subr.bf16.mxu0 %v4715_v50  ;;  %v4795_v41 = vcombine.high %v230_v36, %v234_v37  ;;  %v94_v42 = vld [vmem:[%s7293_s1 + $0x208] sm:$0xff] }
  0xa6   :  { %3413 = vmatpush1.bf16.msra.mxu1 %v4722_v49  ;;  %v98_v43 = vld [vmem:[%s7293_s1 + $0x228] sm:$0xff]  ;;  %v4794_v49 = vcombine.low %v230_v36, %v234_v37 }
  0xa7   :  { %3414 = vmatprep.subr.bf16.mxu1 %v4843_v23  ;;  %v222_v45 = vld [vmem:[%s7293_s1 + $0x608] sm:$0xff]  ;;  %v4659_v50 = vcombine.high %v94_v42, %v98_v43 }
  0xa8   :  { %3372 = vmatpush2.bf16.msra.mxu0 %v4714_v52  ;;  %v226_v46 = vld [vmem:[%s7293_s1 + $0x628] sm:$0xff]  ;;  %v4658_v52 = vcombine.low %v94_v42, %v98_v43 }
  0xa9   :  { %3373 = vmatprep.subr.bf16.mxu0 %v4707_v56  ;;  %v4787_v23 = vcombine.high %v222_v45, %v226_v46  ;;  %v342_v24 = vld [vmem:[%s7293_s1 + $0x9c8] sm:$0xff] }
  0xaa   :  { %3415 = vmatpush2.bf16.msra.mxu1 %v4842_v53  ;;  %v346_v51 = vld [vmem:[%s7293_s1 + $0x9e8] sm:$0xff]  ;;  %v4786_v53 = vcombine.low %v222_v45, %v226_v46 }
  0xab   :  { %3416 = vmatprep.subr.bf16.mxu1 %v4835_v57  ;;  %v470_v55 = vld [vmem:[%s7293_s1 + $0xdc8] sm:$0xff]  ;;  %v4907_v56 = vcombine.high %v342_v24, %v346_v51 }
  0xac   :  { %3374 = vmatpush2.bf16.msra.mxu0 %v4706_v2  ;;  %v474_v26 = vld [vmem:[%s7293_s1 + $0xde8] sm:$0xff]  ;;  %v4906_v2 = vcombine.low %v342_v24, %v346_v51 }
  0xad   :  { %3375 = vmatprep.subr.bf16.mxu0 %v4699_v4  ;;  %v5035_v57 = vcombine.high %v470_v55, %v474_v26  ;;  %v334_v61 = vld [vmem:[%s7293_s1 + $0x988] sm:$0xff] }
  0xae   :  { %3417 = vmatpush2.bf16.msra.mxu1 %v4834_v3  ;;  %v338_v62 = vld [vmem:[%s7293_s1 + $0x9a8] sm:$0xff]  ;;  %v5034_v3 = vcombine.low %v470_v55, %v474_v26 }
  0xaf   :  { %3418 = vmatprep.subr.bf16.mxu1 %v4827_v5  ;;  %v462_v0 = vld [vmem:[%s7293_s1 + $0xd88] sm:$0xff]  ;;  %v4899_v4 = vcombine.high %v334_v61, %v338_v62 }
  0xb0   :  { %3376 = vmatpush2.bf16.msra.mxu0 %v4698_v10  ;;  %v466_v1 = vld [vmem:[%s7293_s1 + $0xda8] sm:$0xff]  ;;  %v4898_v10 = vcombine.low %v334_v61, %v338_v62 }
  0xb1   :  { %3377 = vmatprep.subr.bf16.mxu0 %v4691_v12  ;;  %v5027_v5 = vcombine.high %v462_v0, %v466_v1  ;;  %v326_v6 = vld [vmem:[%s7293_s1 + $0x948] sm:$0xff] }
  0xb2   :  { %3419 = vmatpush2.bf16.msra.mxu1 %v4826_v11  ;;  %v330_v7 = vld [vmem:[%s7293_s1 + $0x968] sm:$0xff]  ;;  %v5026_v11 = vcombine.low %v462_v0, %v466_v1 }
  0xb3   :  { %3420 = vmatprep.subr.bf16.mxu1 %v4819_v13  ;;  %v454_v8 = vld [vmem:[%s7293_s1 + $0xd48] sm:$0xff]  ;;  %v4891_v12 = vcombine.high %v326_v6, %v330_v7 }
  0xb4   :  { %3378 = vmatpush2.bf16.msra.mxu0 %v4690_v18  ;;  %v458_v9 = vld [vmem:[%s7293_s1 + $0xd68] sm:$0xff]  ;;  %v4890_v18 = vcombine.low %v326_v6, %v330_v7 }
  0xb5   :  { %3379 = vmatprep.subr.bf16.mxu0 %v4683_v20  ;;  %v5019_v13 = vcombine.high %v454_v8, %v458_v9  ;;  %v318_v14 = vld [vmem:[%s7293_s1 + $0x908] sm:$0xff] }
  0xb6   :  { %3421 = vmatpush2.bf16.msra.mxu1 %v4818_v19  ;;  %v322_v15 = vld [vmem:[%s7293_s1 + $0x928] sm:$0xff]  ;;  %v5018_v19 = vcombine.low %v454_v8, %v458_v9 }
  0xb7   :  { %3422 = vmatprep.subr.bf16.mxu1 %v4811_v22  ;;  %v446_v16 = vld [vmem:[%s7293_s1 + $0xd08] sm:$0xff]  ;;  %v4883_v20 = vcombine.high %v318_v14, %v322_v15 }
  0xb8   :  { %3380 = vmatpush2.bf16.msra.mxu0 %v4682_v59  ;;  %v450_v17 = vld [vmem:[%s7293_s1 + $0xd28] sm:$0xff]  ;;  %v4882_v59 = vcombine.low %v318_v14, %v322_v15 }
  0xb9   :  { %3381 = vmatprep.subr.bf16.mxu0 %v4675_v31  ;;  %v5011_v22 = vcombine.high %v446_v16, %v450_v17  ;;  %v310_v54 = vld [vmem:[%s7293_s1 + $0x8c8] sm:$0xff] }
  0xba   :  { %3423 = vmatpush2.bf16.msra.mxu1 %v4810_v60  ;;  %v314_v27 = vld [vmem:[%s7293_s1 + $0x8e8] sm:$0xff]  ;;  %v5010_v60 = vcombine.low %v446_v16, %v450_v17 }
  0xbb   :  { %3424 = vmatprep.subr.bf16.mxu1 %v4803_v32  ;;  %v438_v28 = vld [vmem:[%s7293_s1 + $0xcc8] sm:$0xff]  ;;  %v4875_v31 = vcombine.high %v310_v54, %v314_v27 }
  0xbc   :  { %3382 = vmatpush2.bf16.msra.mxu0 %v4674_v38  ;;  %v442_v29 = vld [vmem:[%s7293_s1 + $0xce8] sm:$0xff]  ;;  %v4874_v38 = vcombine.low %v310_v54, %v314_v27 }
  0xbd   :  { %3383 = vmatprep.subr.bf16.mxu0 %v4667_v40  ;;  %v5003_v32 = vcombine.high %v438_v28, %v442_v29  ;;  %v302_v34 = vld [vmem:[%s7293_s1 + $0x888] sm:$0xff] }
  0xbe   :  { %3425 = vmatpush2.bf16.msra.mxu1 %v4802_v39  ;;  %v306_v35 = vld [vmem:[%s7293_s1 + $0x8a8] sm:$0xff]  ;;  %v5002_v39 = vcombine.low %v438_v28, %v442_v29 }
  0xbf   :  { %3426 = vmatprep.subr.bf16.mxu1 %v4795_v41  ;;  %v430_v36 = vld [vmem:[%s7293_s1 + $0xc88] sm:$0xff]  ;;  %v4867_v40 = vcombine.high %v302_v34, %v306_v35 }
  0xc0   :  { %3384 = vmatpush2.bf16.msra.mxu0 %v4666_v48  ;;  %v434_v37 = vld [vmem:[%s7293_s1 + $0xca8] sm:$0xff]  ;;  %v4866_v48 = vcombine.low %v302_v34, %v306_v35 }
  0xc1   :  { %3385 = vmatprep.subr.bf16.mxu0 %v4659_v50  ;;  %v4995_v41 = vcombine.high %v430_v36, %v434_v37  ;;  %v294_v42 = vld [vmem:[%s7293_s1 + $0x848] sm:$0xff] }
  0xc2   :  { %3427 = vmatpush2.bf16.msra.mxu1 %v4794_v49  ;;  %v298_v43 = vld [vmem:[%s7293_s1 + $0x868] sm:$0xff]  ;;  %v4994_v49 = vcombine.low %v430_v36, %v434_v37 }
  0xc3   :  { %3428 = vmatprep.subr.bf16.mxu1 %v4787_v23  ;;  %v422_v45 = vld [vmem:[%s7293_s1 + $0xc48] sm:$0xff]  ;;  %v4859_v50 = vcombine.high %v294_v42, %v298_v43 }
  0xc4   :  { %3386 = vmatpush2.bf16.msra.mxu0 %v4658_v52  ;;  %v426_v46 = vld [vmem:[%s7293_s1 + $0xc68] sm:$0xff]  ;;  %v4858_v52 = vcombine.low %v294_v42, %v298_v43 }
  0xc5   :  { %3441 = vmatprep.subr.bf16.mxu0 %v4907_v56  ;;  %v4987_v23 = vcombine.high %v422_v45, %v426_v46  ;;  %v286_v24 = vld [vmem:[%s7293_s1 + $0x808] sm:$0xff] }
  0xc6   :  { %3429 = vmatpush2.bf16.msra.mxu1 %v4786_v53  ;;  %v290_v51 = vld [vmem:[%s7293_s1 + $0x828] sm:$0xff]  ;;  %v4986_v53 = vcombine.low %v422_v45, %v426_v46 }
  0xc7   :  { %3484 = vmatprep.subr.bf16.mxu1 %v5035_v57  ;;  %3388 = vmatmul.mubr.bf16.vlgmr.msra.gmra.mxu0 %v5596_v21  ;;  %v414_v55 = vld [vmem:[%s7293_s1 + $0xc08] sm:$0xff]  ;;  %v4851_v56 = vcombine.high %v286_v24, %v290_v51 }
  0xc8   :  { %3442 = vmatpush1.bf16.msra.mxu0 %v4906_v2  ;;  %3473 = vmatprep.mubr.bf16.mxu0 %v5633_v30  ;;  %v418_v26 = vld [vmem:[%s7293_s1 + $0xc28] sm:$0xff]  ;;  %v4850_v2 = vcombine.low %v286_v24, %v290_v51 }
  0xc9   :  { %3431 = vmatmul.mubr.bf16.vlgmr.msra.gmra.mxu1 %v5613_v25  ;;  %3443 = vmatprep.subr.bf16.mxu0 %v4899_v4  ;;  %v4979_v57 = vcombine.high %v414_v55, %v418_v26  ;;  %v406_v61 = vld [vmem:[%s7293_s1 + $0xbc8] sm:$0xff] }
  0xca   :  { %3485 = vmatpush1.bf16.msra.mxu1 %v5034_v3  ;;  %3516 = vmatprep.mubr.bf16.mxu1 %v5644_v33  ;;  %v410_v62 = vld [vmem:[%s7293_s1 + $0xbe8] sm:$0xff]  ;;  %v4978_v3 = vcombine.low %v414_v55, %v418_v26 }
  0xcb   :  { %3486 = vmatprep.subr.bf16.mxu1 %v5027_v5  ;;  %v534_v0 = vld [vmem:[%s7293_s1 + $0xfc8] sm:$0xff]  ;;  %v4971_v4 = vcombine.high %v406_v61, %v410_v62 }
  0xcc   :  { %3444 = vmatpush1.bf16.msra.mxu0 %v4898_v10  ;;  %v538_v1 = vld [vmem:[%s7293_s1 + $0xfe8] sm:$0xff]  ;;  %v4970_v10 = vcombine.low %v406_v61, %v410_v62 }
  0xcd   :  { %3445 = vmatprep.subr.bf16.mxu0 %v4891_v12  ;;  %v5099_v5 = vcombine.high %v534_v0, %v538_v1  ;;  %v398_v6 = vld [vmem:[%s7293_s1 + $0xb88] sm:$0xff] }
  0xce   :  { %3487 = vmatpush1.bf16.msra.mxu1 %v5026_v11  ;;  %v402_v7 = vld [vmem:[%s7293_s1 + $0xba8] sm:$0xff]  ;;  %v5098_v11 = vcombine.low %v534_v0, %v538_v1 }
  0xcf   :  { %3488 = vmatprep.subr.bf16.mxu1 %v5019_v13  ;;  %v526_v8 = vld [vmem:[%s7293_s1 + $0xf88] sm:$0xff]  ;;  %v4963_v12 = vcombine.high %v398_v6, %v402_v7 }
  0xd0   :  { %3446 = vmatpush1.bf16.msra.mxu0 %v4890_v18  ;;  %v530_v9 = vld [vmem:[%s7293_s1 + $0xfa8] sm:$0xff]  ;;  %v4962_v18 = vcombine.low %v398_v6, %v402_v7  ;;  %v87_v6 = vld [vmem:[%s7293_s1 + $0x1d0] sm:$0xff] }
  0xd1   :  { %3447 = vmatprep.subr.bf16.mxu0 %v4883_v20  ;;  %v5091_v13 = vcombine.high %v526_v8, %v530_v9  ;;  %v390_v14 = vld [vmem:[%s7293_s1 + $0xb48] sm:$0xff]  ;;  %v91_v7 = vld [vmem:[%s7293_s1 + $0x1f0] sm:$0xff] }
  0xd2   :  { %3489 = vmatpush1.bf16.msra.mxu1 %v5018_v19  ;;  %v394_v15 = vld [vmem:[%s7293_s1 + $0xb68] sm:$0xff]  ;;  %v5090_v19 = vcombine.low %v526_v8, %v530_v9  ;;  %v215_v8 = vld [vmem:[%s7293_s1 + $0x5d0] sm:$0xff] }
  0xd3   :  { %3490 = vmatprep.subr.bf16.mxu1 %v5011_v22  ;;  %v518_v16 = vld [vmem:[%s7293_s1 + $0xf48] sm:$0xff]  ;;  %v4955_v20 = vcombine.high %v390_v14, %v394_v15  ;;  %v219_v9 = vld [vmem:[%s7293_s1 + $0x5f0] sm:$0xff] }
  0xd4   :  { %3448 = vmatpush1.bf16.msra.mxu0 %v4882_v59  ;;  %v522_v17 = vld [vmem:[%s7293_s1 + $0xf68] sm:$0xff]  ;;  %v4954_v59 = vcombine.low %v390_v14, %v394_v15  ;;  %v79_v14 = vld [vmem:[%s7293_s1 + $0x190] sm:$0xff] }
  0xd5   :  { %3449 = vmatprep.subr.bf16.mxu0 %v4875_v31  ;;  %v5083_v22 = vcombine.high %v518_v16, %v522_v17  ;;  %v382_v54 = vld [vmem:[%s7293_s1 + $0xb08] sm:$0xff]  ;;  %v83_v15 = vld [vmem:[%s7293_s1 + $0x1b0] sm:$0xff] }
  0xd6   :  { %3491 = vmatpush1.bf16.msra.mxu1 %v5010_v60  ;;  %v386_v27 = vld [vmem:[%s7293_s1 + $0xb28] sm:$0xff]  ;;  %v5082_v60 = vcombine.low %v518_v16, %v522_v17  ;;  %v207_v16 = vld [vmem:[%s7293_s1 + $0x590] sm:$0xff] }
  0xd7   :  { %3492 = vmatprep.subr.bf16.mxu1 %v5003_v32  ;;  %v510_v28 = vld [vmem:[%s7293_s1 + $0xf08] sm:$0xff]  ;;  %v4947_v31 = vcombine.high %v382_v54, %v386_v27  ;;  %v211_v17 = vld [vmem:[%s7293_s1 + $0x5b0] sm:$0xff] }
  0xd8   :  { %3450 = vmatpush1.bf16.msra.mxu0 %v4874_v38  ;;  %v514_v29 = vld [vmem:[%s7293_s1 + $0xf28] sm:$0xff]  ;;  %v4946_v38 = vcombine.low %v382_v54, %v386_v27  ;;  %v71_v54 = vld [vmem:[%s7293_s1 + $0x150] sm:$0xff] }
  0xd9   :  { %3451 = vmatprep.subr.bf16.mxu0 %v4867_v40  ;;  %v5075_v32 = vcombine.high %v510_v28, %v514_v29  ;;  %v374_v34 = vld [vmem:[%s7293_s1 + $0xac8] sm:$0xff]  ;;  %v75_v27 = vld [vmem:[%s7293_s1 + $0x170] sm:$0xff] }
  0xda   :  { %3493 = vmatpush1.bf16.msra.mxu1 %v5002_v39  ;;  %v378_v35 = vld [vmem:[%s7293_s1 + $0xae8] sm:$0xff]  ;;  %v5074_v39 = vcombine.low %v510_v28, %v514_v29  ;;  %v199_v28 = vld [vmem:[%s7293_s1 + $0x550] sm:$0xff] }
  0xdb   :  { %3494 = vmatprep.subr.bf16.mxu1 %v4995_v41  ;;  %v502_v36 = vld [vmem:[%s7293_s1 + $0xec8] sm:$0xff]  ;;  %v4939_v40 = vcombine.high %v374_v34, %v378_v35  ;;  %v203_v29 = vld [vmem:[%s7293_s1 + $0x570] sm:$0xff] }
  0xdc   :  { %3452 = vmatpush1.bf16.msra.mxu0 %v4866_v48  ;;  %v506_v37 = vld [vmem:[%s7293_s1 + $0xee8] sm:$0xff]  ;;  %v4938_v48 = vcombine.low %v374_v34, %v378_v35  ;;  %v63_v34 = vld [vmem:[%s7293_s1 + $0x110] sm:$0xff] }
  0xdd   :  { %3453 = vmatprep.subr.bf16.mxu0 %v4859_v50  ;;  %v5067_v41 = vcombine.high %v502_v36, %v506_v37  ;;  %v366_v42 = vld [vmem:[%s7293_s1 + $0xa88] sm:$0xff]  ;;  %v67_v35 = vld [vmem:[%s7293_s1 + $0x130] sm:$0xff] }
  0xde   :  { %3495 = vmatpush1.bf16.msra.mxu1 %v4994_v49  ;;  %v370_v43 = vld [vmem:[%s7293_s1 + $0xaa8] sm:$0xff]  ;;  %v5066_v49 = vcombine.low %v502_v36, %v506_v37  ;;  %v191_v36 = vld [vmem:[%s7293_s1 + $0x510] sm:$0xff] }
  0xdf   :  { %3496 = vmatprep.subr.bf16.mxu1 %v4987_v23  ;;  %v494_v45 = vld [vmem:[%s7293_s1 + $0xe88] sm:$0xff]  ;;  %v4931_v50 = vcombine.high %v366_v42, %v370_v43  ;;  %v195_v37 = vld [vmem:[%s7293_s1 + $0x530] sm:$0xff] }
  0xe0   :  { %3454 = vmatpush1.bf16.msra.mxu0 %v4858_v52  ;;  %v498_v46 = vld [vmem:[%s7293_s1 + $0xea8] sm:$0xff]  ;;  %v4930_v52 = vcombine.low %v366_v42, %v370_v43  ;;  %v55_v42 = vld [vmem:[%s7293_s1 + $0xd0] sm:$0xff] }
  0xe1   :  { %3455 = vmatprep.subr.bf16.mxu0 %v4851_v56  ;;  %v5059_v23 = vcombine.high %v494_v45, %v498_v46  ;;  %v358_v24 = vld [vmem:[%s7293_s1 + $0xa48] sm:$0xff]  ;;  %v59_v43 = vld [vmem:[%s7293_s1 + $0xf0] sm:$0xff] }
  0xe2   :  { %3497 = vmatpush1.bf16.msra.mxu1 %v4986_v53  ;;  %v362_v51 = vld [vmem:[%s7293_s1 + $0xa68] sm:$0xff]  ;;  %v5058_v53 = vcombine.low %v494_v45, %v498_v46  ;;  %v183_v45 = vld [vmem:[%s7293_s1 + $0x4d0] sm:$0xff] }
  0xe3   :  { %3498 = vmatprep.subr.bf16.mxu1 %v4979_v57  ;;  %v486_v55 = vld [vmem:[%s7293_s1 + $0xe48] sm:$0xff]  ;;  %v4923_v56 = vcombine.high %v358_v24, %v362_v51  ;;  %v187_v46 = vld [vmem:[%s7293_s1 + $0x4f0] sm:$0xff] }
  0xe4   :  { %3456 = vmatpush1.bf16.msra.mxu0 %v4850_v2  ;;  %v490_v26 = vld [vmem:[%s7293_s1 + $0xe68] sm:$0xff]  ;;  %v4922_v2 = vcombine.low %v358_v24, %v362_v51  ;;  %v47_v24 = vld [vmem:[%s7293_s1 + $0x90] sm:$0xff] }
  0xe5   :  { %3457 = vmatprep.subr.bf16.mxu0 %v4971_v4  ;;  %v5051_v57 = vcombine.high %v486_v55, %v490_v26  ;;  %v350_v61 = vld [vmem:[%s7293_s1 + $0xa08] sm:$0xff]  ;;  %v51_v51 = vld [vmem:[%s7293_s1 + $0xb0] sm:$0xff] }
  0xe6   :  { %3499 = vmatpush1.bf16.msra.mxu1 %v4978_v3  ;;  %v354_v62 = vld [vmem:[%s7293_s1 + $0xa28] sm:$0xff]  ;;  %v5050_v3 = vcombine.low %v486_v55, %v490_v26  ;;  %v175_v55 = vld [vmem:[%s7293_s1 + $0x490] sm:$0xff] }
  0xe7   :  { %3500 = vmatprep.subr.bf16.mxu1 %v5099_v5  ;;  %v478_v0 = vld [vmem:[%s7293_s1 + $0xe08] sm:$0xff]  ;;  %v4915_v4 = vcombine.high %v350_v61, %v354_v62  ;;  %v179_v26 = vld [vmem:[%s7293_s1 + $0x4b0] sm:$0xff] }
  0xe8   :  { %3458 = vmatpush2.bf16.msra.mxu0 %v4970_v10  ;;  %v482_v1 = vld [vmem:[%s7293_s1 + $0xe28] sm:$0xff]  ;;  %v4914_v10 = vcombine.low %v350_v61, %v354_v62  ;;  %v39_v61 = vld [vmem:[%s7293_s1 + $0x50] sm:$0xff] }
  0xe9   :  { %3459 = vmatprep.subr.bf16.mxu0 %v4963_v12  ;;  %v5043_v5 = vcombine.high %v478_v0, %v482_v1  ;;  %v4653_v12 = vcombine.high %v87_v6, %v91_v7  ;;  %v43_v62 = vld [vmem:[%s7293_s1 + $0x70] sm:$0xff] }
  0xea   :  { %3501 = vmatpush2.bf16.msra.mxu1 %v5098_v11  ;;  %v5042_v11 = vcombine.low %v478_v0, %v482_v1  ;;  %v167_v0 = vld [vmem:[%s7293_s1 + $0x450] sm:$0xff] }
  0xeb   :  { %3502 = vmatprep.subr.bf16.mxu1 %v5091_v13  ;;  %v4781_v13 = vcombine.high %v215_v8, %v219_v9  ;;  %v171_v1 = vld [vmem:[%s7293_s1 + $0x470] sm:$0xff] }
  0xec   :  { %3460 = vmatpush2.bf16.msra.mxu0 %v4962_v18  ;;  %v4652_v18 = vcombine.low %v87_v6, %v91_v7  ;;  %v31_v6 = vld [vmem:[%s7293_s1 + $0x10] sm:$0xff] }
  0xed   :  { %3461 = vmatprep.subr.bf16.mxu0 %v4955_v20  ;;  %v4645_v20 = vcombine.high %v79_v14, %v83_v15  ;;  %v35_v7 = vld [vmem:[%s7293_s1 + $0x30] sm:$0xff] }
  0xee   :  { %3503 = vmatpush2.bf16.msra.mxu1 %v5090_v19  ;;  %v4780_v19 = vcombine.low %v215_v8, %v219_v9  ;;  %v159_v8 = vld [vmem:[%s7293_s1 + $0x410] sm:$0xff] }
  0xef   :  { %3504 = vmatprep.subr.bf16.mxu1 %v5083_v22  ;;  %v4773_v22 = vcombine.high %v207_v16, %v211_v17  ;;  %v163_v9 = vld [vmem:[%s7293_s1 + $0x430] sm:$0xff] }
  0xf0   :  { %3462 = vmatpush2.bf16.msra.mxu0 %v4954_v59  ;;  %v4644_v59 = vcombine.low %v79_v14, %v83_v15  ;;  %v151_v14 = vld [vmem:[%s7293_s1 + $0x3d0] sm:$0xff] }
  0xf1   :  { %3463 = vmatprep.subr.bf16.mxu0 %v4947_v31  ;;  %v4637_v31 = vcombine.high %v71_v54, %v75_v27  ;;  %v155_v15 = vld [vmem:[%s7293_s1 + $0x3f0] sm:$0xff] }
  0xf2   :  { %3505 = vmatpush2.bf16.msra.mxu1 %v5082_v60  ;;  %v4772_v60 = vcombine.low %v207_v16, %v211_v17  ;;  %v279_v16 = vld [vmem:[%s7293_s1 + $0x7d0] sm:$0xff] }
  0xf3   :  { %3506 = vmatprep.subr.bf16.mxu1 %v5075_v32  ;;  %v4765_v32 = vcombine.high %v199_v28, %v203_v29  ;;  %v283_v17 = vld [vmem:[%s7293_s1 + $0x7f0] sm:$0xff] }
  0xf4   :  { %3464 = vmatpush2.bf16.msra.mxu0 %v4946_v38  ;;  %v4636_v38 = vcombine.low %v71_v54, %v75_v27  ;;  %v143_v54 = vld [vmem:[%s7293_s1 + $0x390] sm:$0xff] }
  0xf5   :  { %3465 = vmatprep.subr.bf16.mxu0 %v4939_v40  ;;  %v4629_v40 = vcombine.high %v63_v34, %v67_v35  ;;  %v147_v27 = vld [vmem:[%s7293_s1 + $0x3b0] sm:$0xff] }
  0xf6   :  { %3507 = vmatpush2.bf16.msra.mxu1 %v5074_v39  ;;  %v4764_v39 = vcombine.low %v199_v28, %v203_v29  ;;  %v271_v28 = vld [vmem:[%s7293_s1 + $0x790] sm:$0xff] }
  0xf7   :  { %3508 = vmatprep.subr.bf16.mxu1 %v5067_v41  ;;  %v4757_v41 = vcombine.high %v191_v36, %v195_v37  ;;  %v275_v29 = vld [vmem:[%s7293_s1 + $0x7b0] sm:$0xff] }
  0xf8   :  { %3466 = vmatpush2.bf16.msra.mxu0 %v4938_v48  ;;  %v4628_v48 = vcombine.low %v63_v34, %v67_v35  ;;  %v135_v34 = vld [vmem:[%s7293_s1 + $0x350] sm:$0xff] }
  0xf9   :  { %3467 = vmatprep.subr.bf16.mxu0 %v4931_v50  ;;  %v4621_v50 = vcombine.high %v55_v42, %v59_v43  ;;  %v139_v35 = vld [vmem:[%s7293_s1 + $0x370] sm:$0xff] }
  0xfa   :  { %3509 = vmatpush2.bf16.msra.mxu1 %v5066_v49  ;;  %v4756_v49 = vcombine.low %v191_v36, %v195_v37  ;;  %v263_v36 = vld [vmem:[%s7293_s1 + $0x750] sm:$0xff] }
  0xfb   :  { %3510 = vmatprep.subr.bf16.mxu1 %v5059_v23  ;;  %v4749_v23 = vcombine.high %v183_v45, %v187_v46  ;;  %v267_v37 = vld [vmem:[%s7293_s1 + $0x770] sm:$0xff] }
  0xfc   :  { %3468 = vmatpush2.bf16.msra.mxu0 %v4930_v52  ;;  %v4620_v52 = vcombine.low %v55_v42, %v59_v43  ;;  %v127_v42 = vld [vmem:[%s7293_s1 + $0x310] sm:$0xff] }
  0xfd   :  { %3469 = vmatprep.subr.bf16.mxu0 %v4923_v56  ;;  %v4613_v56 = vcombine.high %v47_v24, %v51_v51  ;;  %v131_v43 = vld [vmem:[%s7293_s1 + $0x330] sm:$0xff] }
  0xfe   :  { %3511 = vmatpush2.bf16.msra.mxu1 %v5058_v53  ;;  %v4748_v53 = vcombine.low %v183_v45, %v187_v46  ;;  %v255_v45 = vld [vmem:[%s7293_s1 + $0x710] sm:$0xff] }
  0xff   :  { %3512 = vmatprep.subr.bf16.mxu1 %v5051_v57  ;;  %v4741_v57 = vcombine.high %v175_v55, %v179_v26  ;;  %v259_v46 = vld [vmem:[%s7293_s1 + $0x730] sm:$0xff] }
 0x100   :  { %3470 = vmatpush2.bf16.msra.mxu0 %v4922_v2  ;;  %v4612_v2 = vcombine.low %v47_v24, %v51_v51  ;;  %v119_v24 = vld [vmem:[%s7293_s1 + $0x2d0] sm:$0xff] }
 0x101   :  { %3471 = vmatprep.subr.bf16.mxu0 %v4915_v4  ;;  %v4605_v4 = vcombine.high %v39_v61, %v43_v62  ;;  %v123_v51 = vld [vmem:[%s7293_s1 + $0x2f0] sm:$0xff] }
 0x102   :  { %3513 = vmatpush2.bf16.msra.mxu1 %v5050_v3  ;;  %v4740_v3 = vcombine.low %v175_v55, %v179_v26  ;;  %v247_v55 = vld [vmem:[%s7293_s1 + $0x6d0] sm:$0xff] }
 0x103   :  { %3514 = vmatprep.subr.bf16.mxu1 %v5043_v5  ;;  %v4733_v5 = vcombine.high %v167_v0, %v171_v1  ;;  %v251_v26 = vld [vmem:[%s7293_s1 + $0x6f0] sm:$0xff] }
 0x104   :  { %3472 = vmatpush2.bf16.msra.mxu0 %v4914_v10  ;;  %v4604_v10 = vcombine.low %v39_v61, %v43_v62  ;;  %v111_v61 = vld [vmem:[%s7293_s1 + $0x290] sm:$0xff] }
 0x105   :  { %3527 = vmatprep.subr.bf16.mxu0 %v4653_v12  ;;  %v4597_v12 = vcombine.high %v31_v6, %v35_v7  ;;  %v115_v62 = vld [vmem:[%s7293_s1 + $0x2b0] sm:$0xff] }
 0x106   :  { %3515 = vmatpush2.bf16.msra.mxu1 %v5042_v11  ;;  %v4732_v11 = vcombine.low %v167_v0, %v171_v1  ;;  %v239_v0 = vld [vmem:[%s7293_s1 + $0x690] sm:$0xff] }
 0x107   :  { %3570 = vmatprep.subr.bf16.mxu1 %v4781_v13  ;;  %3474 = vmatmul.mubr.bf16.vlgmr.msra.gmra.mxu0 %v5825_v44  ;;  %v4725_v13 = vcombine.high %v159_v8, %v163_v9  ;;  %v243_v1 = vld [vmem:[%s7293_s1 + $0x6b0] sm:$0xff] }
 0x108   :  { %3528 = vmatpush1.bf16.msra.mxu0 %v4652_v18  ;;  %3559 = vmatprep.mubr.bf16.mxu0 %v5453_v58  ;;  %v4596_v18 = vcombine.low %v31_v6, %v35_v7  ;;  %v103_v6 = vld [vmem:[%s7293_s1 + $0x250] sm:$0xff] }
 0x109   :  { %3517 = vmatmul.mubr.bf16.vlgmr.msra.gmra.mxu1 %v5835_v47  ;;  %3529 = vmatprep.subr.bf16.mxu0 %v4645_v20  ;;  %v4717_v20 = vcombine.high %v151_v14, %v155_v15  ;;  %v107_v7 = vld [vmem:[%s7293_s1 + $0x270] sm:$0xff] }
 0x10a   :  { %3571 = vmatpush1.bf16.msra.mxu1 %v4780_v19  ;;  %3602 = vmatprep.mubr.bf16.mxu1 %v5473_v63  ;;  %v4724_v19 = vcombine.low %v159_v8, %v163_v9  ;;  %v231_v8 = vld [vmem:[%s7293_s1 + $0x650] sm:$0xff] }
 0x10b   :  { %3572 = vmatprep.subr.bf16.mxu1 %v4773_v22  ;;  %v4845_v22 = vcombine.high %v279_v16, %v283_v17  ;;  %v235_v9 = vld [vmem:[%s7293_s1 + $0x670] sm:$0xff] }
 0x10c   :  { %3530 = vmatpush1.bf16.msra.mxu0 %v4644_v59  ;;  %v4716_v59 = vcombine.low %v151_v14, %v155_v15  ;;  %v95_v14 = vld [vmem:[%s7293_s1 + $0x210] sm:$0xff] }
 0x10d   :  { %3531 = vmatprep.subr.bf16.mxu0 %v4637_v31  ;;  %v4709_v31 = vcombine.high %v143_v54, %v147_v27  ;;  %v99_v15 = vld [vmem:[%s7293_s1 + $0x230] sm:$0xff] }
 0x10e   :  { %3573 = vmatpush1.bf16.msra.mxu1 %v4772_v60  ;;  %v4844_v60 = vcombine.low %v279_v16, %v283_v17  ;;  %v223_v16 = vld [vmem:[%s7293_s1 + $0x610] sm:$0xff] }
 0x10f   :  { %3574 = vmatprep.subr.bf16.mxu1 %v4765_v32  ;;  %v4837_v32 = vcombine.high %v271_v28, %v275_v29  ;;  %v227_v17 = vld [vmem:[%s7293_s1 + $0x630] sm:$0xff] }
 0x110   :  { %3532 = vmatpush1.bf16.msra.mxu0 %v4636_v38  ;;  %v4708_v38 = vcombine.low %v143_v54, %v147_v27  ;;  %v343_v54 = vld [vmem:[%s7293_s1 + $0x9d0] sm:$0xff] }
 0x111   :  { %3533 = vmatprep.subr.bf16.mxu0 %v4629_v40  ;;  %v4701_v40 = vcombine.high %v135_v34, %v139_v35  ;;  %v347_v27 = vld [vmem:[%s7293_s1 + $0x9f0] sm:$0xff] }
 0x112   :  { %3575 = vmatpush1.bf16.msra.mxu1 %v4764_v39  ;;  %v4836_v39 = vcombine.low %v271_v28, %v275_v29  ;;  %v471_v28 = vld [vmem:[%s7293_s1 + $0xdd0] sm:$0xff] }
 0x113   :  { %3576 = vmatprep.subr.bf16.mxu1 %v4757_v41  ;;  %v4829_v41 = vcombine.high %v263_v36, %v267_v37  ;;  %v475_v29 = vld [vmem:[%s7293_s1 + $0xdf0] sm:$0xff] }
 0x114   :  { %3534 = vmatpush1.bf16.msra.mxu0 %v4628_v48  ;;  %v4700_v48 = vcombine.low %v135_v34, %v139_v35  ;;  %v335_v34 = vld [vmem:[%s7293_s1 + $0x990] sm:$0xff] }
 0x115   :  { %3535 = vmatprep.subr.bf16.mxu0 %v4621_v50  ;;  %v4693_v50 = vcombine.high %v127_v42, %v131_v43  ;;  %v339_v35 = vld [vmem:[%s7293_s1 + $0x9b0] sm:$0xff] }
 0x116   :  { %3577 = vmatpush1.bf16.msra.mxu1 %v4756_v49  ;;  %v4828_v49 = vcombine.low %v263_v36, %v267_v37  ;;  %v463_v36 = vld [vmem:[%s7293_s1 + $0xd90] sm:$0xff] }
 0x117   :  { %3578 = vmatprep.subr.bf16.mxu1 %v4749_v23  ;;  %v4821_v23 = vcombine.high %v255_v45, %v259_v46  ;;  %v467_v37 = vld [vmem:[%s7293_s1 + $0xdb0] sm:$0xff] }
 0x118   :  { %3536 = vmatpush1.bf16.msra.mxu0 %v4620_v52  ;;  %v4692_v52 = vcombine.low %v127_v42, %v131_v43  ;;  %v327_v42 = vld [vmem:[%s7293_s1 + $0x950] sm:$0xff] }
 0x119   :  { %3537 = vmatprep.subr.bf16.mxu0 %v4613_v56  ;;  %v4685_v56 = vcombine.high %v119_v24, %v123_v51  ;;  %v331_v43 = vld [vmem:[%s7293_s1 + $0x970] sm:$0xff] }
 0x11a   :  { %3579 = vmatpush1.bf16.msra.mxu1 %v4748_v53  ;;  %v4820_v53 = vcombine.low %v255_v45, %v259_v46  ;;  %v455_v45 = vld [vmem:[%s7293_s1 + $0xd50] sm:$0xff] }
 0x11b   :  { %3580 = vmatprep.subr.bf16.mxu1 %v4741_v57  ;;  %v4813_v57 = vcombine.high %v247_v55, %v251_v26  ;;  %v459_v46 = vld [vmem:[%s7293_s1 + $0xd70] sm:$0xff] }
 0x11c   :  { %3538 = vmatpush1.bf16.msra.mxu0 %v4612_v2  ;;  %v4684_v2 = vcombine.low %v119_v24, %v123_v51  ;;  %v319_v24 = vld [vmem:[%s7293_s1 + $0x910] sm:$0xff] }
 0x11d   :  { %3539 = vmatprep.subr.bf16.mxu0 %v4605_v4  ;;  %v4677_v4 = vcombine.high %v111_v61, %v115_v62  ;;  %v323_v51 = vld [vmem:[%s7293_s1 + $0x930] sm:$0xff] }
 0x11e   :  { %3581 = vmatpush1.bf16.msra.mxu1 %v4740_v3  ;;  %v4812_v3 = vcombine.low %v247_v55, %v251_v26  ;;  %v447_v55 = vld [vmem:[%s7293_s1 + $0xd10] sm:$0xff] }
 0x11f   :  { %3582 = vmatprep.subr.bf16.mxu1 %v4733_v5  ;;  %v4805_v5 = vcombine.high %v239_v0, %v243_v1  ;;  %v451_v26 = vld [vmem:[%s7293_s1 + $0xd30] sm:$0xff] }
 0x120   :  { %3540 = vmatpush1.bf16.msra.mxu0 %v4604_v10  ;;  %v4676_v10 = vcombine.low %v111_v61, %v115_v62  ;;  %v311_v61 = vld [vmem:[%s7293_s1 + $0x8d0] sm:$0xff] }
 0x121   :  { %3541 = vmatprep.subr.bf16.mxu0 %v4597_v12  ;;  %v4669_v12 = vcombine.high %v103_v6, %v107_v7  ;;  %v315_v62 = vld [vmem:[%s7293_s1 + $0x8f0] sm:$0xff] }
 0x122   :  { %3583 = vmatpush1.bf16.msra.mxu1 %v4732_v11  ;;  %v4804_v11 = vcombine.low %v239_v0, %v243_v1  ;;  %v439_v0 = vld [vmem:[%s7293_s1 + $0xcd0] sm:$0xff] }
 0x123   :  { %3584 = vmatprep.subr.bf16.mxu1 %v4725_v13  ;;  %v4797_v13 = vcombine.high %v231_v8, %v235_v9  ;;  %v443_v1 = vld [vmem:[%s7293_s1 + $0xcf0] sm:$0xff] }
 0x124   :  { %3542 = vmatpush1.bf16.msra.mxu0 %v4596_v18  ;;  %v4668_v18 = vcombine.low %v103_v6, %v107_v7  ;;  %v303_v6 = vld [vmem:[%s7293_s1 + $0x890] sm:$0xff] }
 0x125   :  { %3543 = vmatprep.subr.bf16.mxu0 %v4717_v20  ;;  %v4661_v20 = vcombine.high %v95_v14, %v99_v15  ;;  %v307_v7 = vld [vmem:[%s7293_s1 + $0x8b0] sm:$0xff] }
 0x126   :  { %3585 = vmatpush1.bf16.msra.mxu1 %v4724_v19  ;;  %v4796_v19 = vcombine.low %v231_v8, %v235_v9  ;;  %v431_v8 = vld [vmem:[%s7293_s1 + $0xc90] sm:$0xff] }
 0x127   :  { %3586 = vmatprep.subr.bf16.mxu1 %v4845_v22  ;;  %v4789_v22 = vcombine.high %v223_v16, %v227_v17  ;;  %v435_v9 = vld [vmem:[%s7293_s1 + $0xcb0] sm:$0xff] }
 0x128   :  { %3544 = vmatpush2.bf16.msra.mxu0 %v4716_v59  ;;  %v4660_v59 = vcombine.low %v95_v14, %v99_v15  ;;  %v295_v14 = vld [vmem:[%s7293_s1 + $0x850] sm:$0xff] }
 0x129   :  { %3545 = vmatprep.subr.bf16.mxu0 %v4709_v31  ;;  %v4909_v31 = vcombine.high %v343_v54, %v347_v27  ;;  %v299_v15 = vld [vmem:[%s7293_s1 + $0x870] sm:$0xff] }
 0x12a   :  { %3587 = vmatpush2.bf16.msra.mxu1 %v4844_v60  ;;  %v4788_v60 = vcombine.low %v223_v16, %v227_v17  ;;  %v423_v16 = vld [vmem:[%s7293_s1 + $0xc50] sm:$0xff] }
 0x12b   :  { %3588 = vmatprep.subr.bf16.mxu1 %v4837_v32  ;;  %v5037_v32 = vcombine.high %v471_v28, %v475_v29  ;;  %v427_v17 = vld [vmem:[%s7293_s1 + $0xc70] sm:$0xff] }
 0x12c   :  { %3546 = vmatpush2.bf16.msra.mxu0 %v4708_v38  ;;  %v4908_v38 = vcombine.low %v343_v54, %v347_v27  ;;  %v287_v54 = vld [vmem:[%s7293_s1 + $0x810] sm:$0xff] }
 0x12d   :  { %3547 = vmatprep.subr.bf16.mxu0 %v4701_v40  ;;  %v4901_v40 = vcombine.high %v335_v34, %v339_v35  ;;  %v291_v27 = vld [vmem:[%s7293_s1 + $0x830] sm:$0xff] }
 0x12e   :  { %3589 = vmatpush2.bf16.msra.mxu1 %v4836_v39  ;;  %v5036_v39 = vcombine.low %v471_v28, %v475_v29  ;;  %v415_v28 = vld [vmem:[%s7293_s1 + $0xc10] sm:$0xff] }
 0x12f   :  { %3590 = vmatprep.subr.bf16.mxu1 %v4829_v41  ;;  %v5029_v41 = vcombine.high %v463_v36, %v467_v37  ;;  %v419_v29 = vld [vmem:[%s7293_s1 + $0xc30] sm:$0xff] }
 0x130   :  { %3548 = vmatpush2.bf16.msra.mxu0 %v4700_v48  ;;  %v4900_v48 = vcombine.low %v335_v34, %v339_v35  ;;  %v407_v34 = vld [vmem:[%s7293_s1 + $0xbd0] sm:$0xff] }
 0x131   :  { %3549 = vmatprep.subr.bf16.mxu0 %v4693_v50  ;;  %v4893_v50 = vcombine.high %v327_v42, %v331_v43  ;;  %v411_v35 = vld [vmem:[%s7293_s1 + $0xbf0] sm:$0xff] }
 0x132   :  { %3591 = vmatpush2.bf16.msra.mxu1 %v4828_v49  ;;  %v5028_v49 = vcombine.low %v463_v36, %v467_v37  ;;  %v535_v36 = vld [vmem:[%s7293_s1 + $0xfd0] sm:$0xff] }
 0x133   :  { %3592 = vmatprep.subr.bf16.mxu1 %v4821_v23  ;;  %v5021_v23 = vcombine.high %v455_v45, %v459_v46  ;;  %v539_v37 = vld [vmem:[%s7293_s1 + $0xff0] sm:$0xff] }
 0x134   :  { %3550 = vmatpush2.bf16.msra.mxu0 %v4692_v52  ;;  %v4892_v52 = vcombine.low %v327_v42, %v331_v43  ;;  %v399_v42 = vld [vmem:[%s7293_s1 + $0xb90] sm:$0xff] }
 0x135   :  { %3551 = vmatprep.subr.bf16.mxu0 %v4685_v56  ;;  %v4885_v56 = vcombine.high %v319_v24, %v323_v51  ;;  %v403_v43 = vld [vmem:[%s7293_s1 + $0xbb0] sm:$0xff] }
 0x136   :  { %3593 = vmatpush2.bf16.msra.mxu1 %v4820_v53  ;;  %v5020_v53 = vcombine.low %v455_v45, %v459_v46  ;;  %v527_v45 = vld [vmem:[%s7293_s1 + $0xf90] sm:$0xff] }
 0x137   :  { %3594 = vmatprep.subr.bf16.mxu1 %v4813_v57  ;;  %v5013_v57 = vcombine.high %v447_v55, %v451_v26  ;;  %v531_v46 = vld [vmem:[%s7293_s1 + $0xfb0] sm:$0xff] }
 0x138   :  { %3552 = vmatpush2.bf16.msra.mxu0 %v4684_v2  ;;  %v4884_v2 = vcombine.low %v319_v24, %v323_v51  ;;  %v391_v24 = vld [vmem:[%s7293_s1 + $0xb50] sm:$0xff] }
 0x139   :  { %3553 = vmatprep.subr.bf16.mxu0 %v4677_v4  ;;  %v4877_v4 = vcombine.high %v311_v61, %v315_v62  ;;  %v395_v51 = vld [vmem:[%s7293_s1 + $0xb70] sm:$0xff] }
 0x13a   :  { %3595 = vmatpush2.bf16.msra.mxu1 %v4812_v3  ;;  %v5012_v3 = vcombine.low %v447_v55, %v451_v26  ;;  %v519_v55 = vld [vmem:[%s7293_s1 + $0xf50] sm:$0xff] }
 0x13b   :  { %3596 = vmatprep.subr.bf16.mxu1 %v4805_v5  ;;  %v5005_v5 = vcombine.high %v439_v0, %v443_v1  ;;  %v523_v26 = vld [vmem:[%s7293_s1 + $0xf70] sm:$0xff] }
 0x13c   :  { %3554 = vmatpush2.bf16.msra.mxu0 %v4676_v10  ;;  %v4876_v10 = vcombine.low %v311_v61, %v315_v62  ;;  %v383_v61 = vld [vmem:[%s7293_s1 + $0xb10] sm:$0xff] }
 0x13d   :  { %3555 = vmatprep.subr.bf16.mxu0 %v4669_v12  ;;  %v4869_v12 = vcombine.high %v303_v6, %v307_v7  ;;  %v387_v62 = vld [vmem:[%s7293_s1 + $0xb30] sm:$0xff] }
 0x13e   :  { %3597 = vmatpush2.bf16.msra.mxu1 %v4804_v11  ;;  %v5004_v11 = vcombine.low %v439_v0, %v443_v1  ;;  %v511_v0 = vld [vmem:[%s7293_s1 + $0xf10] sm:$0xff] }
 0x13f   :  { %3598 = vmatprep.subr.bf16.mxu1 %v4797_v13  ;;  %v4997_v13 = vcombine.high %v431_v8, %v435_v9  ;;  %v515_v1 = vld [vmem:[%s7293_s1 + $0xf30] sm:$0xff] }
 0x140   :  { %3556 = vmatpush2.bf16.msra.mxu0 %v4668_v18  ;;  %v4868_v18 = vcombine.low %v303_v6, %v307_v7  ;;  %v375_v6 = vld [vmem:[%s7293_s1 + $0xad0] sm:$0xff] }
 0x141   :  { %3557 = vmatprep.subr.bf16.mxu0 %v4661_v20  ;;  %v4861_v20 = vcombine.high %v295_v14, %v299_v15  ;;  %v379_v7 = vld [vmem:[%s7293_s1 + $0xaf0] sm:$0xff] }
 0x142   :  { %3599 = vmatpush2.bf16.msra.mxu1 %v4796_v19  ;;  %v4996_v19 = vcombine.low %v431_v8, %v435_v9  ;;  %v503_v8 = vld [vmem:[%s7293_s1 + $0xed0] sm:$0xff] }
 0x143   :  { %3600 = vmatprep.subr.bf16.mxu1 %v4789_v22  ;;  %v4989_v22 = vcombine.high %v423_v16, %v427_v17  ;;  %v507_v9 = vld [vmem:[%s7293_s1 + $0xef0] sm:$0xff] }
 0x144   :  { %3558 = vmatpush2.bf16.msra.mxu0 %v4660_v59  ;;  %v4860_v59 = vcombine.low %v295_v14, %v299_v15  ;;  %v367_v14 = vld [vmem:[%s7293_s1 + $0xa90] sm:$0xff] }
 0x145   :  { %3613 = vmatprep.subr.bf16.mxu0 %v4909_v31  ;;  %v4853_v31 = vcombine.high %v287_v54, %v291_v27  ;;  %v371_v15 = vld [vmem:[%s7293_s1 + $0xab0] sm:$0xff] }
 0x146   :  { %3601 = vmatpush2.bf16.msra.mxu1 %v4788_v60  ;;  %v4988_v60 = vcombine.low %v423_v16, %v427_v17  ;;  %v495_v16 = vld [vmem:[%s7293_s1 + $0xe90] sm:$0xff] }
 0x147   :  { %3656 = vmatprep.subr.bf16.mxu1 %v5037_v32  ;;  %3560 = vmatmul.mubr.bf16.vlgmr.msra.gmra.mxu0 %v5596_v21  ;;  %v4981_v32 = vcombine.high %v415_v28, %v419_v29  ;;  %v499_v17 = vld [vmem:[%s7293_s1 + $0xeb0] sm:$0xff] }
 0x148   :  { %3614 = vmatpush1.bf16.msra.mxu0 %v4908_v38  ;;  %3645 = vmatprep.mubr.bf16.mxu0 %v5633_v30  ;;  %v4852_v38 = vcombine.low %v287_v54, %v291_v27  ;;  %v359_v54 = vld [vmem:[%s7293_s1 + $0xa50] sm:$0xff] }
 0x149   :  { %3603 = vmatmul.mubr.bf16.vlgmr.msra.gmra.mxu1 %v5613_v25  ;;  %3615 = vmatprep.subr.bf16.mxu0 %v4901_v40  ;;  %v4973_v40 = vcombine.high %v407_v34, %v411_v35  ;;  %v363_v27 = vld [vmem:[%s7293_s1 + $0xa70] sm:$0xff] }
 0x14a   :  { %3657 = vmatpush1.bf16.msra.mxu1 %v5036_v39  ;;  %3688 = vmatprep.mubr.bf16.mxu1 %v5644_v33  ;;  %v4980_v39 = vcombine.low %v415_v28, %v419_v29  ;;  %v487_v28 = vld [vmem:[%s7293_s1 + $0xe50] sm:$0xff] }
 0x14b   :  { %3658 = vmatprep.subr.bf16.mxu1 %v5029_v41  ;;  %v5101_v41 = vcombine.high %v535_v36, %v539_v37  ;;  %v491_v29 = vld [vmem:[%s7293_s1 + $0xe70] sm:$0xff] }
 0x14c   :  { %3616 = vmatpush1.bf16.msra.mxu0 %v4900_v48  ;;  %v4972_v48 = vcombine.low %v407_v34, %v411_v35  ;;  %v351_v34 = vld [vmem:[%s7293_s1 + $0xa10] sm:$0xff] }
 0x14d   :  { %3617 = vmatprep.subr.bf16.mxu0 %v4893_v50  ;;  %v4965_v50 = vcombine.high %v399_v42, %v403_v43  ;;  %v355_v35 = vld [vmem:[%s7293_s1 + $0xa30] sm:$0xff] }
 0x14e   :  { %3659 = vmatpush1.bf16.msra.mxu1 %v5028_v49  ;;  %v5100_v49 = vcombine.low %v535_v36, %v539_v37  ;;  %v479_v36 = vld [vmem:[%s7293_s1 + $0xe10] sm:$0xff] }
 0x14f   :  { %3660 = vmatprep.subr.bf16.mxu1 %v5021_v23  ;;  %v5093_v23 = vcombine.high %v527_v45, %v531_v46  ;;  %v483_v37 = vld [vmem:[%s7293_s1 + $0xe30] sm:$0xff] }
 0x150   :  { %3618 = vmatpush1.bf16.msra.mxu0 %v4892_v52  ;;  %v4964_v52 = vcombine.low %v399_v42, %v403_v43  ;;  %v88_v42 = vld [vmem:[%s7293_s1 + $0x1d8] sm:$0xff] }
 0x151   :  { %3619 = vmatprep.subr.bf16.mxu0 %v4885_v56  ;;  %v4957_v56 = vcombine.high %v391_v24, %v395_v51  ;;  %v92_v43 = vld [vmem:[%s7293_s1 + $0x1f8] sm:$0xff] }
 0x152   :  { %3661 = vmatpush1.bf16.msra.mxu1 %v5020_v53  ;;  %v5092_v53 = vcombine.low %v527_v45, %v531_v46  ;;  %v216_v45 = vld [vmem:[%s7293_s1 + $0x5d8] sm:$0xff] }
 0x153   :  { %3662 = vmatprep.subr.bf16.mxu1 %v5013_v57  ;;  %v5085_v57 = vcombine.high %v519_v55, %v523_v26  ;;  %v220_v46 = vld [vmem:[%s7293_s1 + $0x5f8] sm:$0xff] }
 0x154   :  { %3620 = vmatpush1.bf16.msra.mxu0 %v4884_v2  ;;  %v4956_v2 = vcombine.low %v391_v24, %v395_v51  ;;  %v80_v24 = vld [vmem:[%s7293_s1 + $0x198] sm:$0xff] }
 0x155   :  { %3621 = vmatprep.subr.bf16.mxu0 %v4877_v4  ;;  %v4949_v4 = vcombine.high %v383_v61, %v387_v62  ;;  %v84_v51 = vld [vmem:[%s7293_s1 + $0x1b8] sm:$0xff] }
 0x156   :  { %3663 = vmatpush1.bf16.msra.mxu1 %v5012_v3  ;;  %v5084_v3 = vcombine.low %v519_v55, %v523_v26  ;;  %v208_v55 = vld [vmem:[%s7293_s1 + $0x598] sm:$0xff] }
 0x157   :  { %3664 = vmatprep.subr.bf16.mxu1 %v5005_v5  ;;  %v5077_v5 = vcombine.high %v511_v0, %v515_v1  ;;  %v212_v26 = vld [vmem:[%s7293_s1 + $0x5b8] sm:$0xff] }
 0x158   :  { %3622 = vmatpush1.bf16.msra.mxu0 %v4876_v10  ;;  %v4948_v10 = vcombine.low %v383_v61, %v387_v62  ;;  %v76_v61 = vld [vmem:[%s7293_s1 + $0x178] sm:$0xff]  ;;  %v4775_v62 = vcombine.high %v208_v55, %v212_v26 }
 0x159   :  { %3623 = vmatprep.subr.bf16.mxu0 %v4869_v12  ;;  %v4941_v12 = vcombine.high %v375_v6, %v379_v7 }
 0x15a   :  { %3665 = vmatpush1.bf16.msra.mxu1 %v5004_v11  ;;  %v5076_v11 = vcombine.low %v511_v0, %v515_v1  ;;  %v200_v0 = vld [vmem:[%s7293_s1 + $0x558] sm:$0xff] }
 0x15b   :  { %3666 = vmatprep.subr.bf16.mxu1 %v4997_v13  ;;  %v5069_v13 = vcombine.high %v503_v8, %v507_v9  ;;  %v204_v1 = vld [vmem:[%s7293_s1 + $0x578] sm:$0xff] }
 0x15c   :  { %3624 = vmatpush1.bf16.msra.mxu0 %v4868_v18  ;;  %v4940_v18 = vcombine.low %v375_v6, %v379_v7  ;;  %v68_v6 = vld [vmem:[%s7293_s1 + $0x138] sm:$0xff]  ;;  %v4767_v7 = vcombine.high %v200_v0, %v204_v1 }
 0x15d   :  { %3625 = vmatprep.subr.bf16.mxu0 %v4861_v20  ;;  %v4933_v20 = vcombine.high %v367_v14, %v371_v15 }
 0x15e   :  { %3667 = vmatpush1.bf16.msra.mxu1 %v4996_v19  ;;  %v5068_v19 = vcombine.low %v503_v8, %v507_v9  ;;  %v192_v8 = vld [vmem:[%s7293_s1 + $0x518] sm:$0xff] }
 0x15f   :  { %3668 = vmatprep.subr.bf16.mxu1 %v4989_v22  ;;  %v5061_v22 = vcombine.high %v495_v16, %v499_v17  ;;  %v196_v9 = vld [vmem:[%s7293_s1 + $0x538] sm:$0xff] }
 0x160   :  { %3626 = vmatpush1.bf16.msra.mxu0 %v4860_v59  ;;  %v4932_v59 = vcombine.low %v367_v14, %v371_v15  ;;  %v4759_v14 = vcombine.high %v192_v8, %v196_v9  ;;  %v188_v15 = vld [vmem:[%s7293_s1 + $0x4f8] sm:$0xff] }
 0x161   :  { %3627 = vmatprep.subr.bf16.mxu0 %v4853_v31  ;;  %v4925_v31 = vcombine.high %v359_v54, %v363_v27 }
 0x162   :  { %3669 = vmatpush1.bf16.msra.mxu1 %v4988_v60  ;;  %v5060_v60 = vcombine.low %v495_v16, %v499_v17  ;;  %v48_v17 = vld [vmem:[%s7293_s1 + $0x98] sm:$0xff] }
 0x163   :  { %3670 = vmatprep.subr.bf16.mxu1 %v4981_v32  ;;  %v5053_v32 = vcombine.high %v487_v28, %v491_v29 }
 0x164   :  { %3628 = vmatpush1.bf16.msra.mxu0 %v4852_v38  ;;  %v4924_v38 = vcombine.low %v359_v54, %v363_v27  ;;  %v176_v54 = vld [vmem:[%s7293_s1 + $0x498] sm:$0xff] }
 0x165   :  { %3629 = vmatprep.subr.bf16.mxu0 %v4973_v40  ;;  %v4917_v40 = vcombine.high %v351_v34, %v355_v35  ;;  %v180_v27 = vld [vmem:[%s7293_s1 + $0x4b8] sm:$0xff] }
 0x166   :  { %3671 = vmatpush1.bf16.msra.mxu1 %v4980_v39  ;;  %v5052_v39 = vcombine.low %v487_v28, %v491_v29  ;;  %v40_v29 = vld [vmem:[%s7293_s1 + $0x58] sm:$0xff] }
 0x167   :  { %3672 = vmatprep.subr.bf16.mxu1 %v5101_v41  ;;  %v5045_v41 = vcombine.high %v479_v36, %v483_v37 }
 0x168   :  { %3630 = vmatpush2.bf16.msra.mxu0 %v4972_v48  ;;  %v4916_v48 = vcombine.low %v351_v34, %v355_v35  ;;  %v168_v34 = vld [vmem:[%s7293_s1 + $0x458] sm:$0xff] }
 0x169   :  { %3631 = vmatprep.subr.bf16.mxu0 %v4965_v50  ;;  %v4655_v50 = vcombine.high %v88_v42, %v92_v43  ;;  %v172_v35 = vld [vmem:[%s7293_s1 + $0x478] sm:$0xff] }
 0x16a   :  { %3673 = vmatpush2.bf16.msra.mxu1 %v5100_v49  ;;  %v5044_v49 = vcombine.low %v479_v36, %v483_v37  ;;  %v32_v37 = vld [vmem:[%s7293_s1 + $0x18] sm:$0xff] }
 0x16b   :  { %3674 = vmatprep.subr.bf16.mxu1 %v5093_v23  ;;  %v4783_v23 = vcombine.high %v216_v45, %v220_v46 }
 0x16c   :  { %3632 = vmatpush2.bf16.msra.mxu0 %v4964_v52  ;;  %v4654_v52 = vcombine.low %v88_v42, %v92_v43  ;;  %v160_v42 = vld [vmem:[%s7293_s1 + $0x418] sm:$0xff] }
 0x16d   :  { %3633 = vmatprep.subr.bf16.mxu0 %v4957_v56  ;;  %v4647_v56 = vcombine.high %v80_v24, %v84_v51  ;;  %v164_v43 = vld [vmem:[%s7293_s1 + $0x438] sm:$0xff] }
 0x16e   :  { %3675 = vmatpush2.bf16.msra.mxu1 %v5092_v53  ;;  %v4782_v53 = vcombine.low %v216_v45, %v220_v46  ;;  %v152_v46 = vld [vmem:[%s7293_s1 + $0x3d8] sm:$0xff] }
 0x16f   :  { %3676 = vmatprep.subr.bf16.mxu1 %v5085_v57  ;;  %v72_v57 = vld [vmem:[%s7293_s1 + $0x158] sm:$0xff] }
 0x170   :  { %3634 = vmatpush2.bf16.msra.mxu0 %v4956_v2  ;;  %v4646_v2 = vcombine.low %v80_v24, %v84_v51  ;;  %v280_v24 = vld [vmem:[%s7293_s1 + $0x7d8] sm:$0xff] }
 0x171   :  { %3635 = vmatprep.subr.bf16.mxu0 %v4949_v4  ;;  %v4774_v4 = vcombine.low %v208_v55, %v212_v26  ;;  %v284_v51 = vld [vmem:[%s7293_s1 + $0x7f8] sm:$0xff] }
 0x172   :  { %3677 = vmatpush2.bf16.msra.mxu1 %v5084_v3  ;;  %v64_v3 = vld [vmem:[%s7293_s1 + $0x118] sm:$0xff] }
 0x173   :  { %3678 = vmatprep.subr.bf16.mxu1 %v5077_v5  ;;  %v4639_v5 = vcombine.high %v72_v57, %v76_v61  ;;  %v4630_v16 = vcombine.low %v64_v3, %v68_v6  ;;  %v144_v26 = vld [vmem:[%s7293_s1 + $0x398] sm:$0xff] }
 0x174   :  { %3636 = vmatpush2.bf16.msra.mxu0 %v4948_v10  ;;  %v4638_v10 = vcombine.low %v72_v57, %v76_v61  ;;  %v4847_v57 = vcombine.high %v280_v24, %v284_v51  ;;  %v272_v61 = vld [vmem:[%s7293_s1 + $0x798] sm:$0xff] }
 0x175   :  { %3637 = vmatprep.subr.bf16.mxu0 %v4941_v12  ;;  %v4766_v12 = vcombine.low %v200_v0, %v204_v1  ;;  %v136_v1 = vld [vmem:[%s7293_s1 + $0x358] sm:$0xff] }
 0x176   :  { %3679 = vmatpush2.bf16.msra.mxu1 %v5076_v11  ;;  %v56_v11 = vld [vmem:[%s7293_s1 + $0xd8] sm:$0xff] }
 0x177   :  { %3680 = vmatprep.subr.bf16.mxu1 %v5069_v13  ;;  %v60_v13 = vld [vmem:[%s7293_s1 + $0xf8] sm:$0xff] }
 0x178   :  { %3638 = vmatpush2.bf16.msra.mxu0 %v4940_v18  ;;  %v4758_v18 = vcombine.low %v192_v8, %v196_v9  ;;  %v4622_v28 = vcombine.low %v56_v11, %v60_v13  ;;  %v128_v9 = vld [vmem:[%s7293_s1 + $0x318] sm:$0xff] }
 0x179   :  { %3639 = vmatprep.subr.bf16.mxu0 %v4933_v20  ;;  %v52_v20 = vld [vmem:[%s7293_s1 + $0xb8] sm:$0xff] }
 0x17a   :  { %3681 = vmatpush2.bf16.msra.mxu1 %v5068_v19  ;;  %v4623_v19 = vcombine.high %v56_v11, %v60_v13  ;;  %v4614_v36 = vcombine.low %v48_v17, %v52_v20  ;;  %v260_v13 = vld [vmem:[%s7293_s1 + $0x738] sm:$0xff] }
 0x17b   :  { %3682 = vmatprep.subr.bf16.mxu1 %v5061_v22 }
 0x17c   :  { %3640 = vmatpush2.bf16.msra.mxu0 %v4932_v59 }
 0x17d   :  { %3641 = vmatprep.subr.bf16.mxu0 %v4925_v31  ;;  %v44_v31 = vld [vmem:[%s7293_s1 + $0x78] sm:$0xff] }
 0x17e   :  { %3683 = vmatpush2.bf16.msra.mxu1 %v5060_v60  ;;  %v4615_v60 = vcombine.high %v48_v17, %v52_v20  ;;  %v4606_v45 = vcombine.low %v40_v29, %v44_v31  ;;  %v252_v20 = vld [vmem:[%s7293_s1 + $0x6f8] sm:$0xff] }
 0x17f   :  { %3684 = vmatprep.subr.bf16.mxu1 %v5053_v32  ;;  %v4743_v32 = vcombine.high %v176_v54, %v180_v27 }
 0x180   :  { %3642 = vmatpush2.bf16.msra.mxu0 %v4924_v38  ;;  %v4742_v38 = vcombine.low %v176_v54, %v180_v27  ;;  %v112_v27 = vld [vmem:[%s7293_s1 + $0x298] sm:$0xff] }
 0x181   :  { %3643 = vmatprep.subr.bf16.mxu0 %v4917_v40  ;;  %v36_v40 = vld [vmem:[%s7293_s1 + $0x38] sm:$0xff] }
 0x182   :  { %3685 = vmatpush2.bf16.msra.mxu1 %v5052_v39  ;;  %v4607_v39 = vcombine.high %v40_v29, %v44_v31  ;;  %v4598_v55 = vcombine.low %v32_v37, %v36_v40  ;;  %v244_v31 = vld [vmem:[%s7293_s1 + $0x6b8] sm:$0xff] }
 0x183   :  { %3686 = vmatprep.subr.bf16.mxu1 %v5045_v41  ;;  %v4735_v41 = vcombine.high %v168_v34, %v172_v35 }
 0x184   :  { %3644 = vmatpush2.bf16.msra.mxu0 %v4916_v48  ;;  %v4734_v48 = vcombine.low %v168_v34, %v172_v35  ;;  %v104_v35 = vld [vmem:[%s7293_s1 + $0x258] sm:$0xff] }
 0x185   :  { %3699 = vmatprep.subr.bf16.mxu0 %v4655_v50  ;;  %v156_v50 = vld [vmem:[%s7293_s1 + $0x3f8] sm:$0xff] }
 0x186   :  { %3687 = vmatpush2.bf16.msra.mxu1 %v5044_v49  ;;  %v4599_v49 = vcombine.high %v32_v37, %v36_v40  ;;  %v4718_v0 = vcombine.low %v152_v46, %v156_v50  ;;  %v236_v40 = vld [vmem:[%s7293_s1 + $0x678] sm:$0xff] }
 0x187   :  { %3742 = vmatprep.subr.bf16.mxu1 %v4783_v23  ;;  %3646 = vmatmul.mubr.bf16.vlgmr.msra.gmra.mxu0 %v5825_v44  ;;  %v4727_v23 = vcombine.high %v160_v42, %v164_v43 }
 0x188   :  { %3700 = vmatpush1.bf16.msra.mxu0 %v4654_v52  ;;  %3731 = vmatprep.mubr.bf16.mxu0 %v5453_v58  ;;  %v4631_v58 = vcombine.high %v64_v3, %v68_v6  ;;  %v4726_v52 = vcombine.low %v160_v42, %v164_v43  ;;  %v4846_v3 = vcombine.low %v280_v24, %v284_v51  ;;  %v268_v6 = vld [vmem:[%s7293_s1 + $0x778] sm:$0xff] }
 0x189   :  { %3689 = vmatmul.mubr.bf16.vlgmr.msra.gmra.mxu1 %v5835_v47  ;;  %3701 = vmatprep.subr.bf16.mxu0 %v4647_v56  ;;  %v148_v56 = vld [vmem:[%s7293_s1 + $0x3b8] sm:$0xff] }
 0x18a   :  { %3743 = vmatpush1.bf16.msra.mxu1 %v4782_v53  ;;  %3774 = vmatprep.mubr.bf16.mxu1 %v5473_v63  ;;  %v184_v63 = vld [vmem:[%s7293_s1 + $0x4d8] sm:$0xff]  ;;  %v4719_v53 = vcombine.high %v152_v46, %v156_v50  ;;  %v4710_v8 = vcombine.low %v144_v26, %v148_v56 }
 0x18b   :  { %3744 = vmatprep.subr.bf16.mxu1 %v4775_v62  ;;  %v4751_v22 = vcombine.high %v184_v63, %v188_v15  ;;  %v4750_v59 = vcombine.low %v184_v63, %v188_v15  ;;  %v276_v62 = vld [vmem:[%s7293_s1 + $0x7b8] sm:$0xff] }
 0x18c   :  { %3702 = vmatpush1.bf16.msra.mxu0 %v4646_v2  ;;  %v140_v2 = vld [vmem:[%s7293_s1 + $0x378] sm:$0xff]  ;;  %v4838_v11 = vcombine.low %v272_v61, %v276_v62 }
 0x18d   :  { %3703 = vmatprep.subr.bf16.mxu0 %v4639_v5  ;;  %v264_v5 = vld [vmem:[%s7293_s1 + $0x758] sm:$0xff]  ;;  %v4702_v63 = vcombine.low %v136_v1, %v140_v2 }
 0x18e   :  { %3745 = vmatpush1.bf16.msra.mxu1 %v4774_v4  ;;  %v4711_v4 = vcombine.high %v144_v26, %v148_v56  ;;  %v120_v15 = vld [vmem:[%s7293_s1 + $0x2d8] sm:$0xff]  ;;  %v4830_v17 = vcombine.low %v264_v5, %v268_v6 }
 0x18f   :  { %3746 = vmatprep.subr.bf16.mxu1 %v4767_v7  ;;  %v4839_v7 = vcombine.high %v272_v61, %v276_v62  ;;  %v96_v43 = vld [vmem:[%s7293_s1 + $0x218] sm:$0xff] }
 0x190   :  { %3704 = vmatpush1.bf16.msra.mxu0 %v4638_v10  ;;  %v132_v10 = vld [vmem:[%s7293_s1 + $0x338] sm:$0xff] }
 0x191   :  { %3705 = vmatprep.subr.bf16.mxu0 %v4631_v58  ;;  %v256_v58 = vld [vmem:[%s7293_s1 + $0x718] sm:$0xff]  ;;  %v4694_v54 = vcombine.low %v128_v9, %v132_v10 }
 0x192   :  { %3747 = vmatpush1.bf16.msra.mxu1 %v4766_v12  ;;  %v4703_v12 = vcombine.high %v136_v1, %v140_v2  ;;  %v4822_v29 = vcombine.low %v256_v58, %v260_v13  ;;  %v228_v50 = vld [vmem:[%s7293_s1 + $0x638] sm:$0xff] }
 0x193   :  { %3748 = vmatprep.subr.bf16.mxu1 %v4759_v14  ;;  %v4831_v14 = vcombine.high %v264_v5, %v268_v6  ;;  %v472_v56 = vld [vmem:[%s7293_s1 + $0xdd8] sm:$0xff] }
 0x194   :  { %3706 = vmatpush1.bf16.msra.mxu0 %v4630_v16  ;;  %v124_v16 = vld [vmem:[%s7293_s1 + $0x2f8] sm:$0xff] }
 0x195   :  { %3707 = vmatprep.subr.bf16.mxu0 %v4623_v19  ;;  %v248_v19 = vld [vmem:[%s7293_s1 + $0x6d8] sm:$0xff]  ;;  %v4686_v34 = vcombine.low %v120_v15, %v124_v16 }
 0x196   :  { %3749 = vmatpush1.bf16.msra.mxu1 %v4758_v18  ;;  %v4695_v18 = vcombine.high %v128_v9, %v132_v10  ;;  %v4814_v37 = vcombine.low %v248_v19, %v252_v20  ;;  %v336_v2 = vld [vmem:[%s7293_s1 + $0x998] sm:$0xff] }
 0x197   :  { %3750 = vmatprep.subr.bf16.mxu1 %v4751_v22  ;;  %v4823_v22 = vcombine.high %v256_v58, %v260_v13  ;;  %v464_v5 = vld [vmem:[%s7293_s1 + $0xd98] sm:$0xff] }
 0x198   :  { %3708 = vmatpush1.bf16.msra.mxu0 %v4622_v28  ;;  %v116_v28 = vld [vmem:[%s7293_s1 + $0x2b8] sm:$0xff] }
 0x199   :  { %3709 = vmatprep.subr.bf16.mxu0 %v4615_v60  ;;  %v240_v60 = vld [vmem:[%s7293_s1 + $0x698] sm:$0xff]  ;;  %v4678_v42 = vcombine.low %v112_v27, %v116_v28 }
 0x19a   :  { %3751 = vmatpush1.bf16.msra.mxu1 %v4750_v59  ;;  %v4687_v59 = vcombine.high %v120_v15, %v124_v16  ;;  %v4806_v46 = vcombine.low %v240_v60, %v244_v31  ;;  %v468_v6 = vld [vmem:[%s7293_s1 + $0xdb8] sm:$0xff]  ;;  %v6835_v15 = vpop.f32.mrf.mxu1 }
 0x19b   :  { %3752 = vmatprep.subr.bf16.mxu1 %v4743_v32  ;;  %v4815_v32 = vcombine.high %v248_v19, %v252_v20  ;;  %v5031_v10 = vcombine.high %v464_v5, %v468_v6  ;;  %v456_v13 = vld [vmem:[%s7293_s1 + $0xd58] sm:$0xff]  ;;  %v5030_v16 = vcombine.low %v464_v5, %v468_v6 }
 0x19c   :  { %3710 = vmatpush1.bf16.msra.mxu0 %v4614_v36  ;;  %v108_v36 = vld [vmem:[%s7293_s1 + $0x278] sm:$0xff] }
 0x19d   :  { %3711 = vmatprep.subr.bf16.mxu0 %v4607_v39  ;;  %v232_v39 = vld [vmem:[%s7293_s1 + $0x658] sm:$0xff]  ;;  %v4670_v24 = vcombine.low %v104_v35, %v108_v36 }
 0x19e   :  { %3753 = vmatpush1.bf16.msra.mxu1 %v4742_v38  ;;  %v4679_v38 = vcombine.high %v112_v27, %v116_v28  ;;  %v4798_v51 = vcombine.low %v232_v39, %v236_v40  ;;  %v324_v19 = vld [vmem:[%s7293_s1 + $0x938] sm:$0xff]  ;;  %v6853_v27 = vpop.f32.mrf.mxu1 }
 0x19f   :  { %3754 = vmatprep.subr.bf16.mxu1 %v4735_v41  ;;  %v4807_v41 = vcombine.high %v240_v60, %v244_v31  ;;  %v448_v20 = vld [vmem:[%s7293_s1 + $0xd18] sm:$0xff] }
 0x1a0   :  { %3712 = vmatpush1.bf16.msra.mxu0 %v4606_v45  ;;  %v100_v45 = vld [vmem:[%s7293_s1 + $0x238] sm:$0xff] }
 0x1a1   :  { %3713 = vmatprep.subr.bf16.mxu0 %v4599_v49  ;;  %v224_v49 = vld [vmem:[%s7293_s1 + $0x618] sm:$0xff]  ;;  %v4662_v61 = vcombine.low %v96_v43, %v100_v45 }
 0x1a2   :  { %3755 = vmatpush1.bf16.msra.mxu1 %v4734_v48  ;;  %v4671_v48 = vcombine.high %v104_v35, %v108_v36  ;;  %v4791_v26 = vcombine.high %v224_v49, %v228_v50  ;;  %v4790_v62 = vcombine.low %v224_v49, %v228_v50  ;;  %v316_v60 = vld [vmem:[%s7293_s1 + $0x8f8] sm:$0xff]  ;;  %v6869_v35 = vpop.f32.mrf.mxu1 }
 0x1a3   :  { %3756 = vmatprep.subr.bf16.mxu1 %v4727_v23  ;;  %v4799_v23 = vcombine.high %v232_v39, %v236_v40  ;;  %v304_v40 = vld [vmem:[%s7293_s1 + $0x898] sm:$0xff] }
 0x1a4   :  { %3714 = vmatpush1.bf16.msra.mxu0 %v4598_v55  ;;  %v4663_v55 = vcombine.high %v96_v43, %v100_v45  ;;  %v436_v43 = vld [vmem:[%s7293_s1 + $0xcb8] sm:$0xff] }
 0x1a5   :  { %3715 = vmatprep.subr.bf16.mxu0 %v4719_v53  ;;  %v348_v53 = vld [vmem:[%s7293_s1 + $0x9f8] sm:$0xff] }
 0x1a6   :  { %3757 = vmatpush1.bf16.msra.mxu1 %v4726_v52  ;;  %v344_v52 = vld [vmem:[%s7293_s1 + $0x9d8] sm:$0xff] }
 0x1a7   :  { %3758 = vmatprep.subr.bf16.mxu1 %v4847_v57  ;;  %v476_v57 = vld [vmem:[%s7293_s1 + $0xdf8] sm:$0xff] }
 0x1a8   :  { %3716 = vmatpush2.bf16.msra.mxu0 %v4718_v0  ;;  %v4911_v0 = vcombine.high %v344_v52, %v348_v53  ;;  %v5039_v1 = vcombine.high %v472_v56, %v476_v57  ;;  %v420_v5 = vld [vmem:[%s7293_s1 + $0xc38] sm:$0xff] }
 0x1a9   :  { %3717 = vmatprep.subr.bf16.mxu0 %v4711_v4  ;;  %v6811_v4 = vpop.f32.mrf.mxu0 }
 0x1aa   :  { %3759 = vmatpush2.bf16.msra.mxu1 %v4846_v3  ;;  %v340_v3 = vld [vmem:[%s7293_s1 + $0x9b8] sm:$0xff] }
 0x1ab   :  { %3760 = vmatprep.subr.bf16.mxu1 %v4839_v7  ;;  %v4910_v7 = vcombine.low %v344_v52, %v348_v53  ;;  %v4903_v9 = vcombine.high %v336_v2, %v340_v3  ;;  %v6825_v58 = vpop.f32.mrf.mxu0  ;;  %v428_v52 = vld [vmem:[%s7293_s1 + $0xc78] sm:$0xff] }
 0x1ac   :  { %3718 = vmatpush2.bf16.msra.mxu0 %v4710_v8  ;;  %v5038_v8 = vcombine.low %v472_v56, %v476_v57 }
 0x1ad   :  { %3719 = vmatprep.subr.bf16.mxu0 %v4703_v12  ;;  %v332_v12 = vld [vmem:[%s7293_s1 + $0x978] sm:$0xff] }
 0x1ae   :  { %3761 = vmatpush2.bf16.msra.mxu1 %v4838_v11  ;;  %v328_v11 = vld [vmem:[%s7293_s1 + $0x958] sm:$0xff] }
 0x1af   :  { %3762 = vmatprep.subr.bf16.mxu1 %v4831_v14  ;;  %v460_v14 = vld [vmem:[%s7293_s1 + $0xd78] sm:$0xff] }
 0x1b0   :  { %3720 = vmatpush2.bf16.msra.mxu0 %v4702_v63  ;;  %v4902_v63 = vcombine.low %v336_v2, %v340_v3  ;;  %v5022_v28 = vcombine.low %v456_v13, %v460_v14  ;;  %v416_v3 = vld [vmem:[%s7293_s1 + $0xc18] sm:$0xff] }
 0x1b1   :  { %3721 = vmatprep.subr.bf16.mxu0 %v4695_v18  ;;  %v320_v18 = vld [vmem:[%s7293_s1 + $0x918] sm:$0xff] }
 0x1b2   :  { %3763 = vmatpush2.bf16.msra.mxu1 %v4830_v17  ;;  %v4895_v17 = vcombine.high %v328_v11, %v332_v12 }
 0x1b3   :  { %3764 = vmatprep.subr.bf16.mxu1 %v4823_v22  ;;  %v452_v22 = vld [vmem:[%s7293_s1 + $0xd38] sm:$0xff] }
 0x1b4   :  { %3722 = vmatpush2.bf16.msra.mxu0 %v4694_v54  ;;  %v4894_v54 = vcombine.low %v328_v11, %v332_v12  ;;  %v408_v11 = vld [vmem:[%s7293_s1 + $0xbd8] sm:$0xff] }
 0x1b5   :  { %3723 = vmatprep.subr.bf16.mxu0 %v4687_v59  ;;  %v312_v59 = vld [vmem:[%s7293_s1 + $0x8d8] sm:$0xff] }
 0x1b6   :  { %3765 = vmatpush2.bf16.msra.mxu1 %v4822_v29  ;;  %v5015_v29 = vcombine.high %v448_v20, %v452_v22  ;;  %v4878_v45 = vcombine.low %v312_v59, %v316_v60  ;;  %v412_v12 = vld [vmem:[%s7293_s1 + $0xbf8] sm:$0xff] }
 0x1b7   :  { %3766 = vmatprep.subr.bf16.mxu1 %v4815_v32  ;;  %v444_v32 = vld [vmem:[%s7293_s1 + $0xcf8] sm:$0xff] }
 0x1b8   :  { %3724 = vmatpush2.bf16.msra.mxu0 %v4686_v34  ;;  %v4886_v34 = vcombine.low %v320_v18, %v324_v19 }
 0x1b9   :  { %3725 = vmatprep.subr.bf16.mxu0 %v4679_v38  ;;  %v4879_v38 = vcombine.high %v312_v59, %v316_v60  ;;  %v4974_v59 = vcombine.low %v408_v11, %v412_v12 }
 0x1ba   :  { %3767 = vmatpush2.bf16.msra.mxu1 %v4814_v37  ;;  %v5014_v37 = vcombine.low %v448_v20, %v452_v22  ;;  %v400_v20 = vld [vmem:[%s7293_s1 + $0xb98] sm:$0xff] }
 0x1bb   :  { %3768 = vmatprep.subr.bf16.mxu1 %v4807_v41  ;;  %v308_v41 = vld [vmem:[%s7293_s1 + $0x8b8] sm:$0xff] }
 0x1bc   :  { %3726 = vmatpush2.bf16.msra.mxu0 %v4678_v42  ;;  %v432_v42 = vld [vmem:[%s7293_s1 + $0xc98] sm:$0xff]  ;;  %v4871_v50 = vcombine.high %v304_v40, %v308_v41  ;;  %v4870_v53 = vcombine.low %v304_v40, %v308_v41 }
 0x1bd   :  { %3727 = vmatprep.subr.bf16.mxu0 %v4671_v48  ;;  %v4998_v57 = vcombine.low %v432_v42, %v436_v43  ;;  %v404_v22 = vld [vmem:[%s7293_s1 + $0xbb8] sm:$0xff] }
 0x1be   :  { %3769 = vmatpush2.bf16.msra.mxu1 %v4806_v46  ;;  %v6885_v46 = vpop.f32.mrf.mxu1  ;;  %v520_v41 = vld [vmem:[%s7293_s1 + $0xf58] sm:$0xff] }
 0x1bf   :  { %3770 = vmatprep.subr.bf16.mxu1 %v4799_v23  ;;  %v4999_v23 = vcombine.high %v432_v42, %v436_v43  ;;  %v524_v42 = vld [vmem:[%s7293_s1 + $0xf78] sm:$0xff]  ;;  %v4966_v43 = vcombine.low %v400_v20, %v404_v22 }
 0x1c0   :  { %3728 = vmatpush2.bf16.msra.mxu0 %v4670_v24  ;;  %v296_v24 = vld [vmem:[%s7293_s1 + $0x858] sm:$0xff] }
 0x1c1   :  { %3729 = vmatprep.subr.bf16.mxu0 %v4663_v55  ;;  %v6895_v55 = vpop.f32.mrf.mxu1 }
 0x1c2   :  { %3771 = vmatpush2.bf16.msra.mxu1 %v4798_v51  ;;  %v300_v51 = vld [vmem:[%s7293_s1 + $0x878] sm:$0xff] }
 0x1c3   :  { %3772 = vmatprep.subr.bf16.mxu1 %v4791_v26  ;;  %v424_v26 = vld [vmem:[%s7293_s1 + $0xc58] sm:$0xff]  ;;  %v6911_v2 = vpop.f32.mrf.mxu1  ;;  %v4862_v6 = vcombine.low %v296_v24, %v300_v51 }
 0x1c4   :  { %3730 = vmatpush2.bf16.msra.mxu0 %v4662_v61  ;;  %v4863_v61 = vcombine.high %v296_v24, %v300_v51  ;;  %v384_v24 = vld [vmem:[%s7293_s1 + $0xb18] sm:$0xff] }
 0x1c5   :  { %3785 = vmatprep.subr.bf16.mxu0 %v4911_v0  ;;  %v288_v0 = vld [vmem:[%s7293_s1 + $0x818] sm:$0xff] }
 0x1c6   :  { %3773 = vmatpush2.bf16.msra.mxu1 %v4790_v62  ;;  %v4991_v62 = vcombine.high %v424_v26, %v428_v52  ;;  %v388_v51 = vld [vmem:[%s7293_s1 + $0xb38] sm:$0xff] }
 0x1c7   :  { %3828 = vmatprep.subr.bf16.mxu1 %v5039_v1  ;;  %3732 = vmatmul.mubr.bf16.vlgmr.msra.gmra.mxu0 %v5596_v21  ;;  %v5023_v21 = vcombine.high %v456_v13, %v460_v14  ;;  %v292_v1 = vld [vmem:[%s7293_s1 + $0x838] sm:$0xff]  ;;  %v6927_v13 = vpop.f32.mrf.mxu1 }
 0x1c8   :  { %3786 = vmatpush1.bf16.msra.mxu0 %v4910_v7  ;;  %3817 = vmatprep.mubr.bf16.mxu0 %v5633_v30  ;;  %v4887_v30 = vcombine.high %v320_v18, %v324_v19  ;;  %v4975_v18 = vcombine.high %v408_v11, %v412_v12  ;;  %v508_v11 = vld [vmem:[%s7293_s1 + $0xef8] sm:$0xff]  ;;  %v7005_v12 = vld [vmem:[%s7296_s2] sm:$0xff] }
 0x1c9   :  { %3775 = vmatmul.mubr.bf16.vlgmr.msra.gmra.mxu1 %v5613_v25  ;;  %3787 = vmatprep.subr.bf16.mxu0 %v4903_v9  ;;  %v6844_v25 = vpop.f32.mrf.mxu0  ;;  %v4855_v9 = vcombine.high %v288_v0, %v292_v1 }
 0x1ca   :  { %3829 = vmatpush1.bf16.msra.mxu1 %v5038_v8  ;;  %3860 = vmatprep.mubr.bf16.mxu1 %v5644_v33  ;;  %v440_v33 = vld [vmem:[%s7293_s1 + $0xcd8] sm:$0xff]  ;;  %v4990_v8 = vcombine.low %v424_v26, %v428_v52 }
 0x1cb   :  { %3830 = vmatprep.subr.bf16.mxu1 %v5031_v10  ;;  %v6861_v31 = vpop.f32.mrf.mxu0  ;;  %v5007_v39 = vcombine.high %v440_v33, %v444_v32  ;;  %v5006_v49 = vcombine.low %v440_v33, %v444_v32  ;;  %v4983_v10 = vcombine.high %v416_v3, %v420_v5  ;;  %v4967_v32 = vcombine.high %v400_v20, %v404_v22  ;;  %v368_v22 = vld [vmem:[%s7293_s1 + $0xa98] sm:$0xff] }
 0x1cc   :  { %3788 = vmatpush1.bf16.msra.mxu0 %v4902_v63  ;;  %v536_v63 = vld [vmem:[%s7293_s1 + $0xfd8] sm:$0xff] }
 0x1cd   :  { %3789 = vmatprep.subr.bf16.mxu0 %v4895_v17  ;;  %v6871_v36 = vpop.f32.mrf.mxu0  ;;  %v4854_v17 = vcombine.low %v288_v0, %v292_v1  ;;  %v5086_v1 = vcombine.low %v520_v41, %v524_v42 }
 0x1ce   :  { %3831 = vmatpush1.bf16.msra.mxu1 %v5030_v16  ;;  %v540_v16 = vld [vmem:[%s7293_s1 + $0xff8] sm:$0xff] }
 0x1cf   :  { %3832 = vmatprep.subr.bf16.mxu1 %v5023_v21  ;;  %v6887_v48 = vpop.f32.mrf.mxu0  ;;  %v4982_v21 = vcombine.low %v416_v3, %v420_v5  ;;  %v5103_v19 = vcombine.high %v536_v63, %v540_v16  ;;  %v5102_v33 = vcombine.low %v536_v63, %v540_v16  ;;  %v4951_v3 = vcombine.high %v384_v24, %v388_v51 }
 0x1d0   :  { %3790 = vmatpush1.bf16.msra.mxu0 %v4894_v54  ;;  %v6943_v54 = vpop.f32.mrf.mxu1  ;;  %v4950_v16 = vcombine.low %v384_v24, %v388_v51  ;;  %v488_v51 = vld [vmem:[%s7293_s1 + $0xe58] sm:$0xff] }
 0x1d1   :  { %3791 = vmatprep.subr.bf16.mxu0 %v4887_v30  ;;  %v6903_v56 = vpop.f32.mrf.mxu0  ;;  %v528_v30 = vld [vmem:[%s7293_s1 + $0xf98] sm:$0xff] }
 0x1d2   :  { %3833 = vmatpush1.bf16.msra.mxu1 %v5022_v28  ;;  %v6953_v60 = vpop.f32.mrf.mxu1 }
 0x1d3   :  { %3834 = vmatprep.subr.bf16.mxu1 %v5015_v29  ;;  %v6919_v7 = vpop.f32.mrf.mxu0  ;;  %v532_v29 = vld [vmem:[%s7293_s1 + $0xfb8] sm:$0xff] }
 0x1d4   :  { %3792 = vmatpush1.bf16.msra.mxu0 %v4886_v34  ;;  %v5095_v34 = vcombine.high %v528_v30, %v532_v29 }
 0x1d5   :  { %3793 = vmatprep.subr.bf16.mxu0 %v4879_v38  ;;  %v6929_v14 = vpop.f32.mrf.mxu0  ;;  %v396_v38 = vld [vmem:[%s7293_s1 + $0xb78] sm:$0xff] }
 0x1d6   :  { %3835 = vmatpush1.bf16.msra.mxu1 %v5014_v37  ;;  %v392_v37 = vld [vmem:[%s7293_s1 + $0xb58] sm:$0xff] }
 0x1d7   :  { %3836 = vmatprep.subr.bf16.mxu1 %v5007_v39  ;;  %v6945_v28 = vpop.f32.mrf.mxu0  ;;  %v543_v39 = vlaneseq }
 0x1d8   :  { %3794 = vmatpush1.bf16.msra.mxu0 %v4878_v45  ;;  %v6969_v45 = vpop.f32.mrf.mxu1 }
 0x1d9   :  { %3795 = vmatprep.subr.bf16.mxu0 %v4871_v50  ;;  %v6961_v40 = vpop.f32.mrf.mxu0  ;;  %v4959_v50 = vcombine.high %v392_v37, %v396_v38  ;;  %v6977_v26 = vshrl.u32 %v543_v39, 7 }
 0x1da   :  { %3837 = vmatpush1.bf16.msra.mxu1 %v5006_v49  ;;  %v5094_v49 = vcombine.low %v528_v30, %v532_v29  ;;  %v372_v30 = vld [vmem:[%s7293_s1 + $0xab8] sm:$0xff] }
 0x1db   :  { %3838 = vmatprep.subr.bf16.mxu1 %v4999_v23  ;;  %v5087_v23 = vcombine.high %v520_v41, %v524_v42  ;;  %v3395_v52 = vpop.f32.mrf.mxu0  ;;  %v557_v63 = vsub.s32 3, %v6977_v26  ;;  %v4935_v42 = vcombine.high %v368_v22, %v372_v30 }
 0x1dc   :  { %3796 = vmatpush1.bf16.msra.mxu0 %v4870_v53  ;;  %v512_v53 = vld [vmem:[%s7293_s1 + $0xf18] sm:$0xff] }
 0x1dd   :  { %3797 = vmatprep.subr.bf16.mxu0 %v4863_v61  ;;  %v4958_v61 = vcombine.low %v392_v37, %v396_v38  ;;  %v6987_v0 = vpop.f32.mrf.mxu0 }
 0x1de   :  { %3839 = vmatpush1.bf16.msra.mxu1 %v4998_v57  ;;  %v516_v57 = vld [vmem:[%s7293_s1 + $0xf38] sm:$0xff] }
 0x1df   :  { %3840 = vmatprep.subr.bf16.mxu1 %v4991_v62  ;;  %v6985_v62 = vpop.f32.mrf.mxu1  ;;  %v5079_v5 = vcombine.high %v512_v53, %v516_v57 }
 0x1e0   :  { %3798 = vmatpush1.bf16.msra.mxu0 %v4862_v6  ;;  %v376_v6 = vld [vmem:[%s7293_s1 + $0xad8] sm:$0xff] }
 0x1e1   :  { %3799 = vmatprep.subr.bf16.mxu0 %v4855_v9  ;;  %v549_v9 = vsub.s32 1, %v6977_v26 }
 0x1e2   :  { %3841 = vmatpush1.bf16.msra.mxu1 %v4990_v8  ;;  %v380_v8 = vld [vmem:[%s7293_s1 + $0xaf8] sm:$0xff] }
 0x1e3   :  { %3842 = vmatprep.subr.bf16.mxu1 %v4983_v10  ;;  %v504_v10 = vld [vmem:[%s7293_s1 + $0xed8] sm:$0xff]  ;;  %v550_v29 = vrot.slane %v7005_v12, %v549_v9  ;;  %v4942_v37 = vcombine.low %v376_v6, %v380_v8 }
 0x1e4   :  { %3800 = vmatpush1.bf16.msra.mxu0 %v4854_v17  ;;  %v3438_v17 = vpop.f32.mrf.mxu1  ;;  %v5071_v20 = vcombine.high %v504_v10, %v508_v11  ;;  %v5070_v41 = vcombine.low %v504_v10, %v508_v11  ;;  %v480_v11 = vld [vmem:[%s7293_s1 + $0xe18] sm:$0xff] }
 0x1e5   :  { %3801 = vmatprep.subr.bf16.mxu0 %v4975_v18  ;;  %v5078_v18 = vcombine.low %v512_v53, %v516_v57  ;;  %v3224_v38 = vadd.f32 %v6861_v31, %v550_v29  ;;  %v3220_v24 = vadd.f32 %v6825_v58, %v550_v29  ;;  %v4934_v57 = vcombine.low %v368_v22, %v372_v30 }
 0x1e6   :  { %3843 = vmatpush1.bf16.msra.mxu1 %v4982_v21  ;;  %v3477_v21 = vpop.f32.mrf.mxu0 }
 0x1e7   :  { %3844 = vmatprep.subr.bf16.mxu1 %v5103_v19  ;;  %v4943_v19 = vcombine.high %v376_v6, %v380_v8  ;;  %v352_v8 = vld [vmem:[%s7293_s1 + $0xa18] sm:$0xff]  ;;  %v3263_v9 = vadd.f32 %v6853_v27, %v3220_v24 }
 0x1e8   :  { %3802 = vmatpush2.bf16.msra.mxu0 %v4974_v59  ;;  %v7015_v59 = vpop.f32.mrf.mxu1  ;;  %v7025_v39 = vpop.f32.mrf.mxu0 }
 0x1e9   :  { %3803 = vmatprep.subr.bf16.mxu0 %v4967_v32  ;;  %v500_v32 = vld [vmem:[%s7293_s1 + $0xeb8] sm:$0xff] }
 0x1ea   :  { %3845 = vmatpush2.bf16.msra.mxu1 %v5102_v33  ;;  %v496_v33 = vld [vmem:[%s7293_s1 + $0xe98] sm:$0xff]  ;;  %v3520_v31 = vpop.f32.mrf.mxu1 }
 0x1eb   :  { %3846 = vmatprep.subr.bf16.mxu1 %v5095_v34  ;;  %v558_v34 = vrot.slane %v7005_v12, %v557_v63  ;;  %v484_v63 = vld [vmem:[%s7293_s1 + $0xe38] sm:$0xff] }
 0x1ec   :  { %3804 = vmatpush2.bf16.msra.mxu0 %v4966_v43  ;;  %v7050_v10 = vpop.f32.mrf.mxu1  ;;  %v5047_v22 = vcombine.high %v480_v11, %v484_v63 }
 0x1ed   :  { %3805 = vmatprep.subr.bf16.mxu0 %v4959_v50  ;;  %v3396_v43 = vadd.f32 %v3395_v52, %v558_v34  ;;  %v360_v50 = vld [vmem:[%s7293_s1 + $0xa58] sm:$0xff]  ;;  %v3392_v53 = vadd.f32 %v6945_v28, %v558_v34  ;;  %v5046_v34 = vcombine.low %v480_v11, %v484_v63 }
 0x1ee   :  { %3847 = vmatpush2.bf16.msra.mxu1 %v5094_v49  ;;  %v5063_v49 = vcombine.high %v496_v33, %v500_v32  ;;  %v492_v52 = vld [vmem:[%s7293_s1 + $0xe78] sm:$0xff]  ;;  %v3524_v29 = vpop.f32.mrf.mxu1 }
 0x1ef   :  { %3848 = vmatprep.subr.bf16.mxu1 %v5087_v23  ;;  %v364_v23 = vld [vmem:[%s7293_s1 + $0xa78] sm:$0xff]  ;;  %v5055_v6 = vcombine.high %v488_v51, %v492_v52  ;;  %v5054_v27 = vcombine.low %v488_v51, %v492_v52  ;;  %v5264_v51 = vld [vmem:[%s7295_s3 + $0xb0] sm:$0xff]   ;;  %v5267_v52 = vld [vmem:[%s7295_s3 + $0x28] sm:$0xff]  }
 0x1f0   :  { %3806 = vmatpush2.bf16.msra.mxu0 %v4958_v61  ;;  %v3267_v61 = vadd.f32 %v6885_v46, %v3224_v38  ;;  %v4927_v58 = vcombine.high %v360_v50, %v364_v23  ;;  %v356_v28 = vld [vmem:[%s7293_s1 + $0xa38] sm:$0xff] }
 0x1f1   :  { %3807 = vmatprep.subr.bf16.mxu0 %v4951_v3  ;;  %v5062_v3 = vcombine.low %v496_v33, %v500_v32  ;;  %v4918_v32 = vcombine.low %v352_v8, %v356_v28  ;;  %v5275_v63 = vld [vmem:[%s7295_s3 + $0x18] sm:$0xff]  }
 0x1f2   :  { %3849 = vmatpush2.bf16.msra.mxu1 %v5086_v1  ;;  %v3481_v1 = vpop.f32.mrf.mxu0  ;;  %v3310_v46 = vadd.f32 %v6919_v7, %v3267_v61  ;;  %v4919_v7 = vcombine.high %v352_v8, %v356_v28  ;;  %v5269_v61 = vld [vmem:[%s7295_s3 + $0x60] sm:$0xff]   ;;  %v5273_v8 = vld [vmem:[%s7295_s3 + $0x58] sm:$0xff]  }
 0x1f3   :  { %3850 = vmatprep.subr.bf16.mxu1 %v5079_v5  ;;  %v3439_v5 = vadd.f32 %v3438_v17, %v3396_v43 }
 0x1f4   :  { %3808 = vmatpush2.bf16.msra.mxu0 %v4950_v16  ;;  %v3435_v16 = vadd.f32 %v6969_v45, %v3392_v53  ;;  %v3353_v30 = vadd.f32 %v6943_v54, %v3310_v46  ;;  %v545_v53 = vsub.s32 0, %v6977_v26 }
 0x1f5   :  { %3809 = vmatprep.subr.bf16.mxu0 %v4943_v19  ;;  %v3482_v17 = vadd.f32 %v3481_v1, %v3439_v5  ;;  %v3306_v19 = vadd.f32 %v6887_v48, %v3263_v9  ;;  %v5257_v48 = vld [vmem:[%s7295_s3 + $0x78] sm:$0xff]   ;;  %v553_v1 = vsub.s32 2, %v6977_v26 }
 0x1f6   :  { %3851 = vmatpush2.bf16.msra.mxu1 %v5078_v18  ;;  %v4926_v18 = vcombine.low %v360_v50, %v364_v23  ;;  %v3880_v54 = vmax.f32 %v3353_v30, 0.0  ;;  %v5262_v23 = vld [vmem:[%s7295_s3 + $0xf0] sm:$0xff]   ;;  %v546_v5 = vrot.slane %v7005_v12, %v545_v53  ;;  %v5274_v9 = vld [vmem:[%s7295_s3 + $0xd8] sm:$0xff]  }
 0x1f7   :  { %3852 = vmatprep.subr.bf16.mxu1 %v5071_v20  ;;  %v3478_v20 = vadd.f32 %v3477_v21, %v3435_v16  ;;  %v3525_v33 = vadd.f32 %v3524_v29, %v3482_v17  ;;  %v3349_v45 = vadd.f32 %v6911_v2, %v3306_v19  ;;  %v5258_v21 = vld [vmem:[%s7295_s3 + $0xf8] sm:$0xff]   ;;  %v554_v28 = vrot.slane %v7005_v12, %v553_v1  ;;  %v5283_v29 = vld [vmem:[%s7295_s3 + $0x8] sm:$0xff]   ;;  %v5299_v1 = vld [vmem:[%s7295_s3 + $0x150] sm:$0xff]  }
 0x1f8   :  { %3810 = vmatpush2.bf16.msra.mxu0 %v4942_v37  ;;  %v5259_v2 = vld [vmem:[%s7295_s3 + $0x38] sm:$0xff]   ;;  %v3222_v46 = vadd.f32 %v6844_v25, %v546_v5  ;;  %v3218_v16 = vadd.f32 %v6811_v4, %v546_v5  ;;  %v5301_v5 = vld [vmem:[%s7295_s3 + $0x148] sm:$0xff]  }
 0x1f9   :  { %3811 = vmatprep.subr.bf16.mxu0 %v4935_v42  ;;  %v3521_v37 = vadd.f32 %v3520_v31, %v3478_v20  ;;  %v3882_v38 = vmax.f32 %v3525_v33, 0.0  ;;  %v5260_v42 = vld [vmem:[%s7295_s3 + $0xb8] sm:$0xff]   ;;  %v5263_v31 = vld [vmem:[%s7295_s3 + $0x30] sm:$0xff]   ;;  %v3394_v11 = vadd.f32 %v6961_v40, %v554_v28  ;;  %v3390_v25 = vadd.f32 %v6929_v14, %v554_v28  ;;  %v5302_v28 = vld [vmem:[%s7295_s3 + $0x108] sm:$0xff]  }
 0x1fa   :  { %3853 = vmatpush2.bf16.msra.mxu1 %v5070_v41  ;;  %v3872_v41 = vmax.f32 %v3349_v45, 0.0  ;;  %v5276_v17 = vld [vmem:[%s7295_s3 + $0x98] sm:$0xff]   ;;  %v5278_v40 = vld [vmem:[%s7295_s3 + $0xd0] sm:$0xff]   ;;  %v3265_v19 = vadd.f32 %v6869_v35, %v3222_v46  ;;  %v5281_v35 = vld [vmem:[%s7295_s3 + $0x48] sm:$0xff]  }
 0x1fb   :  { %3854 = vmatprep.subr.bf16.mxu1 %v5063_v49  ;;  %v3874_v43 = vmax.f32 %v3521_v37, 0.0  ;;  %v5261_v49 = vld [vmem:[%s7295_s3 + $0x70] sm:$0xff]   ;;  %v3437_v4 = vadd.f32 %v6985_v62, %v3394_v11  ;;  %v3433_v62 = vadd.f32 %v6953_v60, %v3390_v25  ;;  %v5284_v60 = vld [vmem:[%s7295_s3 + $0x88] sm:$0xff]   ;;  %v5287_v45 = vld [vmem:[%s7295_s3] sm:$0xff]  }
 0x1fc   :  { %3812 = vmatpush2.bf16.msra.mxu0 %v4934_v57  ;;  %v3888_v50 = vpack.c.bf16 %v3880_v54, %v3872_v41  ;;  %v5268_v57 = vld [vmem:[%s7295_s3 + $0xa8] sm:$0xff]   ;;  %v3308_v20 = vadd.f32 %v6903_v56, %v3265_v19  ;;  %v5280_v14 = vld [vmem:[%s7295_s3 + $0x90] sm:$0xff]   ;;  %v5290_v54 = vld [vmem:[%s7295_s3 + $0x138] sm:$0xff]  }
 0x1fd   :  { %3813 = vmatprep.subr.bf16.mxu0 %v4927_v58  ;;  %v3890_v24 = vpack.c.bf16 %v3882_v38, %v3874_v43  ;;  %v5271_v58 = vld [vmem:[%s7295_s3 + $0x20] sm:$0xff]   ;;  %v3476_v30 = vadd.f32 %v6987_v0, %v3433_v62  ;;  %v5306_v41 = vld [vmem:[%s7295_s3 + $0x1b8] sm:$0xff]   ;;  %v5307_v43 = vld [vmem:[%s7295_s3 + $0x1f0] sm:$0xff]  }
 0x1fe   :  { %3855 = vmatpush2.bf16.msra.mxu1 %v5062_v3  ;;  %v5270_v3 = vld [vmem:[%s7295_s3 + $0xe0] sm:$0xff]   ;;  %v3351_v33 = vadd.f32 %v6927_v13, %v3308_v20  ;;  %v5297_v53 = vld [vmem:[%s7295_s3 + $0x158] sm:$0xff]  }
 0x1ff   :  { %3856 = vmatprep.subr.bf16.mxu1 %v5055_v6  ;;  %v5272_v6 = vld [vmem:[%s7295_s3 + $0xa0] sm:$0xff]   ;;  %v3519_v13 = vadd.f32 %v7015_v59, %v3476_v30 }
 0x200   :  { %3814 = vmatpush2.bf16.msra.mxu0 %v4926_v18  ;;  %v5277_v18 = vld [vmem:[%s7295_s3 + $0x50] sm:$0xff]   ;;  %v5286_v0 = vld [vmem:[%s7295_s3 + $0xc0] sm:$0xff]  }
 0x201   :  { %3815 = vmatprep.subr.bf16.mxu0 %v4919_v7  ;;  %v3261_v7 = vadd.f32 %v6835_v15, %v3218_v16  ;;  %v5282_v15 = vld [vmem:[%s7295_s3 + $0xc8] sm:$0xff]   ;;  %v5303_v11 = vld [vmem:[%s7295_s3 + $0x140] sm:$0xff]  }
 0x202   :  { %3857 = vmatpush2.bf16.msra.mxu1 %v5054_v27  ;;  %v5279_v27 = vld [vmem:[%s7295_s3 + $0x10] sm:$0xff]  }
 0x203   :  { %3858 = vmatprep.subr.bf16.mxu1 %v5047_v22  ;;  %v3480_v22 = vadd.f32 %v7025_v39, %v3437_v4  ;;  %v3304_v56 = vadd.f32 %v6871_v36, %v3261_v7  ;;  %v5285_v39 = vld [vmem:[%s7295_s3 + $0x40] sm:$0xff]  }
 0x204   :  { %3816 = vmatpush2.bf16.msra.mxu0 %v4918_v32 }
 0x205   :  { %5169 = vmatprep.subr.bf16.mxu0 %v5257_v48  ;;  %v3523_v36 = vadd.f32 %v7050_v10, %v3480_v22  ;;  %v3347_v32 = vadd.f32 %v6895_v55, %v3304_v56  ;;  %v5288_v10 = vld [vmem:[%s7295_s3 + $0x80] sm:$0xff]   ;;  %v5289_v48 = vld [vmem:[%s7295_s3 + $0x178] sm:$0xff]  }
 0x206   :  { %3859 = vmatpush2.bf16.msra.mxu1 %v5046_v34  ;;  %v3879_v34 = vmax.f32 %v3351_v33, 0.0  ;;  %v5305_v55 = vld [vmem:[%s7295_s3 + $0x1f8] sm:$0xff]  }
 0x207   :  { %5191 = vmatprep.subr.bf16.mxu1 %v5258_v21  ;;  %3818 = vmatmul.mubr.bf16.vlgmr.msra.gmra.mxu0 %v5825_v44  ;;  %v5265_v44 = vld [vmem:[%s7295_s3 + $0x68] sm:$0xff]   ;;  %v3881_v37 = vmax.f32 %v3523_v36, 0.0  ;;  %v3871_v59 = vmax.f32 %v3347_v32, 0.0  ;;  %v3873_v21 = vmax.f32 %v3519_v13, 0.0  ;;  %v5314_v56 = vld [vmem:[%s7295_s3 + $0x198] sm:$0xff]   ;;  %v5315_v32 = vld [vmem:[%s7295_s3 + $0x1d0] sm:$0xff]  }
 0x208   :  { %5170 = vmatpush3.bf16.msra.mxu0 %v5259_v2  ;;  %4446 = vmatprep.mubr.bf16.mxu0 %v3888_v50  ;;  %v5291_v2 = vld [vmem:[%s7295_s3 + $0x170] sm:$0xff]   ;;  %v5293_v50 = vld [vmem:[%s7295_s3 + $0x168] sm:$0xff]  }
 0x209   :  { %3861 = vmatmul.mubr.bf16.vlgmr.msra.gmra.mxu1 %v5835_v47  ;;  %5171 = vmatprep.subr.bf16.mxu0 %v5261_v49  ;;  %v5266_v47 = vld [vmem:[%s7295_s3 + $0xe8] sm:$0xff]   ;;  %v3887_v38 = vpack.c.bf16 %v3879_v34, %v3871_v59  ;;  %v5292_v49 = vld [vmem:[%s7295_s3 + $0x130] sm:$0xff]  }
 0x20a   :  { %5192 = vmatpush3.bf16.msra.mxu1 %v5260_v42  ;;  %4487 = vmatprep.mubr.bf16.mxu1 %v3890_v24  ;;  %v3889_v42 = vpack.c.bf16 %v3881_v37, %v3873_v21  ;;  %v5309_v24 = vld [vmem:[%s7295_s3 + $0x1e8] sm:$0xff]  }
 0x20b   :  { %5193 = vmatprep.subr.bf16.mxu1 %v5262_v23  ;;  %v5308_v23 = vld [vmem:[%s7295_s3 + $0x1b0] sm:$0xff]  }
 0x20c   :  { %5172 = vmatpush3.bf16.msra.mxu0 %v5263_v31  ;;  %v5294_v31 = vld [vmem:[%s7295_s3 + $0x128] sm:$0xff]  }
 0x20d   :  { %5173 = vmatprep.subr.bf16.mxu0 %v5265_v44  ;;  %v5310_v44 = vld [vmem:[%s7295_s3 + $0x1a8] sm:$0xff]  }
 0x20e   :  { %5194 = vmatpush3.bf16.msra.mxu1 %v5264_v51  ;;  %v5295_v51 = vld [vmem:[%s7295_s3 + $0x160] sm:$0xff]  }
 0x20f   :  { %5195 = vmatprep.subr.bf16.mxu1 %v5266_v47  ;;  %v5311_v47 = vld [vmem:[%s7295_s3 + $0x1e0] sm:$0xff]  }
 0x210   :  { %5174 = vmatpush3.bf16.msra.mxu0 %v5267_v52  ;;  %v5296_v52 = vld [vmem:[%s7295_s3 + $0x120] sm:$0xff]  }
 0x211   :  { %5175 = vmatprep.subr.bf16.mxu0 %v5269_v61  ;;  %v5298_v61 = vld [vmem:[%s7295_s3 + $0x118] sm:$0xff]  }
 0x212   :  { %5196 = vmatpush3.bf16.msra.mxu1 %v5268_v57  ;;  %v5312_v57 = vld [vmem:[%s7295_s3 + $0x1a0] sm:$0xff]  }
 0x213   :  { %5197 = vmatprep.subr.bf16.mxu1 %v5270_v3  ;;  %v5300_v3 = vld [vmem:[%s7295_s3 + $0x110] sm:$0xff]  }
 0x214   :  { %5176 = vmatpush3.bf16.msra.mxu0 %v5271_v58  ;;  %v3561_v58 = vpop.f32.mrf.mxu0 }
 0x215   :  { %5177 = vmatprep.subr.bf16.mxu0 %v5273_v8  ;;  %v565_v8 = vsub.s32 5, %v6977_v26 }
 0x216   :  { %5198 = vmatpush3.bf16.msra.mxu1 %v5272_v6  ;;  %v3604_v6 = vpop.f32.mrf.mxu1  ;;  %v3563_v46 = vpop.f32.mrf.mxu0 }
 0x217   :  { %5199 = vmatprep.subr.bf16.mxu1 %v5274_v9  ;;  %v561_v9 = vsub.s32 4, %v6977_v26  ;;  %v566_v16 = vrot.slane %v7005_v12, %v565_v8 }
 0x218   :  { %5178 = vmatpush3.bf16.msra.mxu0 %v5275_v63  ;;  %v3606_v63 = vpop.f32.mrf.mxu1  ;;  %v3565_v25 = vpop.f32.mrf.mxu0 }
 0x219   :  { %5179 = vmatprep.subr.bf16.mxu0 %v5277_v18  ;;  %v562_v18 = vrot.slane %v7005_v12, %v561_v9  ;;  %v3564_v19 = vadd.f32 %v3563_v46, %v566_v16 }
 0x21a   :  { %5200 = vmatpush3.bf16.msra.mxu1 %v5276_v17  ;;  %v5304_v17 = vld [vmem:[%s7295_s3 + $0x100] sm:$0xff]  }
 0x21b   :  { %5201 = vmatprep.subr.bf16.mxu1 %v5278_v40  ;;  %v3608_v40 = vpop.f32.mrf.mxu1  ;;  %v3562_v4 = vadd.f32 %v3561_v58, %v562_v18  ;;  %v3566_v7 = vadd.f32 %v3565_v25, %v562_v18  ;;  %v3607_v62 = vadd.f32 %v3606_v63, %v3564_v19 }
 0x21c   :  { %5180 = vmatpush3.bf16.msra.mxu0 %v5279_v27  ;;  %v3567_v27 = vpop.f32.mrf.mxu0 }
 0x21d   :  { %5181 = vmatprep.subr.bf16.mxu0 %v5281_v35  ;;  %v3610_v20 = vpop.f32.mrf.mxu1  ;;  %v5313_v35 = vld [vmem:[%s7295_s3 + $0x1d8] sm:$0xff]   ;;  %v3568_v22 = vadd.f32 %v3567_v27, %v566_v16  ;;  %v3605_v30 = vadd.f32 %v3604_v6, %v3562_v4  ;;  %v3609_v33 = vadd.f32 %v3608_v40, %v3566_v7 }
 0x21e   :  { %5202 = vmatpush3.bf16.msra.mxu1 %v5280_v14 }
 0x21f   :  { %5203 = vmatprep.subr.bf16.mxu1 %v5282_v15  ;;  %v3611_v13 = vadd.f32 %v3610_v20, %v3568_v22 }
 0x220   :  { %5182 = vmatpush3.bf16.msra.mxu0 %v5283_v29 }
 0x221   :  { %5183 = vmatprep.subr.bf16.mxu0 %v5285_v39 }
 0x222   :  { %5204 = vmatpush3.bf16.msra.mxu1 %v5284_v60 }
 0x223   :  { %5205 = vmatprep.subr.bf16.mxu1 %v5286_v0 }
 0x224   :  { %5184 = vmatpush3.bf16.msra.mxu0 %v5287_v45 }
 0x225   :  { %5213 = vmatprep.subr.bf16.mxu0 %v5289_v48 }
 0x226   :  { %5206 = vmatpush3.bf16.msra.mxu1 %v5288_v10  ;;  %v5316_v10 = vld [vmem:[%s7295_s3 + $0x190] sm:$0xff]  }
 0x227   :  { %5235 = vmatprep.subr.bf16.mxu1 %v5305_v55  ;;  %4447 = vmatmul.mubr.bf16.vlgmr.msra.gmra.mxu0 %v3887_v38  ;;  %v5317_v38 = vld [vmem:[%s7295_s3 + $0x1c8] sm:$0xff]  }
 0x228   :  { %5214 = vmatpush3.bf16.msra.mxu0 %v5290_v54 }
 0x229   :  { %4488 = vmatmul.mubr.bf16.vlgmr.msra.gmra.mxu1 %v3889_v42  ;;  %5215 = vmatprep.subr.bf16.mxu0 %v5291_v2 }
 0x22a   :  { %5236 = vmatpush3.bf16.msra.mxu1 %v5306_v41  ;;  %v5318_v41 = vld [vmem:[%s7295_s3 + $0x188] sm:$0xff]  }
 0x22b   :  { %5237 = vmatprep.subr.bf16.mxu1 %v5307_v43 }
 0x22c   :  { %5216 = vmatpush3.bf16.msra.mxu0 %v5292_v49 }
 0x22d   :  { %5217 = vmatprep.subr.bf16.mxu0 %v5293_v50 }
 0x22e   :  { %5238 = vmatpush3.bf16.msra.mxu1 %v5308_v23  ;;  %v5319_v23 = vld [vmem:[%s7295_s3 + $0x1c0] sm:$0xff]  }
 0x22f   :  { %5239 = vmatprep.subr.bf16.mxu1 %v5309_v24 }
 0x230   :  { %5218 = vmatpush3.bf16.msra.mxu0 %v5294_v31  ;;  %v5320_v31 = vld [vmem:[%s7295_s3 + $0x180] sm:$0xff]  }
 0x231   :  { %5219 = vmatprep.subr.bf16.mxu0 %v5295_v51 }
 0x232   :  { %5240 = vmatpush3.bf16.msra.mxu1 %v5310_v44 }
 0x233   :  { %5241 = vmatprep.subr.bf16.mxu1 %v5311_v47 }
 0x234   :  { %5220 = vmatpush3.bf16.msra.mxu0 %v5296_v52  ;;  %v573_v52 = vsub.s32 7, %v6977_v26 }
 0x235   :  { %5221 = vmatprep.subr.bf16.mxu0 %v5297_v53  ;;  %v569_v53 = vsub.s32 6, %v6977_v26 }
 0x236   :  { %5242 = vmatpush3.bf16.msra.mxu1 %v5312_v57 }
 0x237   :  { %5243 = vmatprep.subr.bf16.mxu1 %v5313_v35 }
 0x238   :  { %5222 = vmatpush3.bf16.msra.mxu0 %v5298_v61 }
 0x239   :  { %5223 = vmatprep.subr.bf16.mxu0 %v5299_v1  ;;  %v574_v1 = vrot.slane %v7005_v12, %v573_v52 }
 0x23a   :  { %5244 = vmatpush3.bf16.msra.mxu1 %v5314_v56 }
 0x23b   :  { %5245 = vmatprep.subr.bf16.mxu1 %v5315_v32 }
 0x23c   :  { %5224 = vmatpush3.bf16.msra.mxu0 %v5300_v3  ;;  %v570_v3 = vrot.slane %v7005_v12, %v569_v53 }
 0x23d   :  { %5225 = vmatprep.subr.bf16.mxu0 %v5301_v5 }
 0x23e   :  { %5246 = vmatpush3.bf16.msra.mxu1 %v5316_v10 }
 0x23f   :  { %5247 = vmatprep.subr.bf16.mxu1 %v5317_v38 }
 0x240   :  { %5226 = vmatpush3.bf16.msra.mxu0 %v5302_v28 }
 0x241   :  { %5227 = vmatprep.subr.bf16.mxu0 %v5303_v11 }
 0x242   :  { %5248 = vmatpush3.bf16.msra.mxu1 %v5318_v41 }
 0x243   :  { %5249 = vmatprep.subr.bf16.mxu1 %v5319_v23 }
 0x244   :  { %5228 = vmatpush3.bf16.msra.mxu0 %v5304_v17 }
 0x246   :  { %5250 = vmatpush3.bf16.msra.mxu1 %v5320_v31 }
 0x247   :  { %v3647_v14 = vpop.f32.mrf.mxu0 }
 0x248   :  { %v3648_v36 = vadd.f32 %v3647_v14, %v3605_v30 }
 0x249   :  { %v3690_v15 = vpop.f32.mrf.mxu1  ;;  %v3649_v29 = vpop.f32.mrf.mxu0 }
 0x24a   :  { %v3650_v60 = vadd.f32 %v3649_v29, %v3607_v62  ;;  %v3691_v21 = vadd.f32 %v3690_v15, %v3648_v36 }
 0x24b   :  { %v3692_v39 = vpop.f32.mrf.mxu1  ;;  %v3651_v0 = vpop.f32.mrf.mxu0 }
 0x24c   :  { %v3652_v45 = vadd.f32 %v3651_v0, %v3609_v33  ;;  %v3693_v37 = vadd.f32 %v3692_v39, %v3650_v60  ;;  %v3875_v50 = vmax.f32 %v3691_v21, 0.0  ;;  %v5104_v21 = vld [vmem:[%s7297_s4] ss:$0 sm:$0xff] }
 0x24d   :  { %v3694_v34 = vpop.f32.mrf.mxu1  ;;  %v3653_v48 = vpop.f32.mrf.mxu0 }
 0x24e   :  { %v3695_v55 = vadd.f32 %v3694_v34, %v3652_v45  ;;  %v3654_v59 = vadd.f32 %v3653_v48, %v3611_v13  ;;  %v3876_v43 = vmax.f32 %v3693_v37, 0.0 }
 0x24f   :  { %v3696_v54 = vpop.f32.mrf.mxu1 }
 0x250   :  { %v3697_v2 = vadd.f32 %v3696_v54, %v3654_v59  ;;  %v3883_v42 = vmax.f32 %v3695_v55, 0.0 }
 0x252   :  { %v3884_v49 = vmax.f32 %v3697_v2, 0.0  ;;  %v3891_v51 = vpack.c.bf16 %v3883_v42, %v3875_v50 }
 0x254   :  { %v3892_v24 = vpack.c.bf16 %v3884_v49, %v3876_v43 }
 0x256   :  { %4528 = vmatprep.mubr.bf16.mxu0 %v3892_v24 }
 0x257   :  { %4529 = vmatmul.mubr.bf16.vlgmr.msra.gmra.mxu0 %v3891_v51 }
 0x287   :  { %v3733_v44 = vpop.f32.mrf.mxu0 }
 0x288   :  { %v3734_v8 = vadd.f32 %v3733_v44, %v570_v3 }
 0x289   :  { %v3776_v47 = vpop.f32.mrf.mxu1  ;;  %v3735_v57 = vpop.f32.mrf.mxu0 }
 0x28a   :  { %v3736_v6 = vadd.f32 %v3735_v57, %v574_v1  ;;  %v3777_v18 = vadd.f32 %v3776_v47, %v3734_v8 }
 0x28b   :  { %v3778_v61 = vpop.f32.mrf.mxu1  ;;  %v3737_v58 = vpop.f32.mrf.mxu0 }
 0x28c   :  { %v3738_v9 = vadd.f32 %v3737_v58, %v570_v3  ;;  %v3779_v63 = vadd.f32 %v3778_v61, %v3736_v6 }
 0x28d   :  { %v3780_v5 = vpop.f32.mrf.mxu1  ;;  %v3739_v28 = vpop.f32.mrf.mxu0 }
 0x28e   :  { %v3740_v16 = vadd.f32 %v3739_v28, %v574_v1  ;;  %v3781_v26 = vadd.f32 %v3780_v5, %v3738_v9 }
 0x28f   :  { %v3782_v46 = vpop.f32.mrf.mxu1 }
 0x290   :  { %v3783_v7 = vadd.f32 %v3782_v46, %v3740_v16 }
 0x2c7   :  { %v3819_v11 = vpop.f32.mrf.mxu0 }
 0x2c8   :  { %v3820_v4 = vadd.f32 %v3819_v11, %v3777_v18 }
 0x2c9   :  { %v3862_v17 = vpop.f32.mrf.mxu1  ;;  %v3821_v25 = vpop.f32.mrf.mxu0 }
 0x2ca   :  { %v3822_v40 = vadd.f32 %v3821_v25, %v3779_v63  ;;  %v3863_v15 = vadd.f32 %v3862_v17, %v3820_v4 }
 0x2cb   :  { %v3864_v19 = vpop.f32.mrf.mxu1  ;;  %v3823_v27 = vpop.f32.mrf.mxu0 }
 0x2cc   :  { %v3824_v12 = vadd.f32 %v3823_v27, %v3781_v26  ;;  %v3865_v35 = vadd.f32 %v3864_v19, %v3822_v40  ;;  %v3877_v39 = vmax.f32 %v3863_v15, 0.0 }
 0x2cd   :  { %v3866_v20 = vpop.f32.mrf.mxu1  ;;  %v3825_v14 = vpop.f32.mrf.mxu0 }
 0x2ce   :  { %v3867_v62 = vadd.f32 %v3866_v20, %v3824_v12  ;;  %v3826_v22 = vadd.f32 %v3825_v14, %v3783_v7  ;;  %v3878_v33 = vmax.f32 %v3865_v35, 0.0 }
 0x2cf   :  { %v3868_v56 = vpop.f32.mrf.mxu1 }
 0x2d0   :  { %v3869_v30 = vadd.f32 %v3868_v56, %v3826_v22  ;;  %v3885_v29 = vmax.f32 %v3867_v62, 0.0 }
 0x2d2   :  { %v3886_v60 = vmax.f32 %v3869_v30, 0.0  ;;  %v3893_v0 = vpack.c.bf16 %v3885_v29, %v3877_v39 }
 0x2d4   :  { %v3894_v36 = vpack.c.bf16 %v3886_v60, %v3878_v33 }
 0x2d6   :  { %4569 = vmatprep.mubr.bf16.mxu1 %v3894_v36 }
 0x2d7   :  { %4570 = vmatmul.mubr.bf16.vlgmr.msra.gmra.mxu1 %v3893_v0 }
 0x2e7   :  { %v5185_v32 = vpop.f32.mrf.mxu0 }
 0x2e9   :  { %v5186_v13 = vpop.f32.mrf.mxu0  ;;  %v5207_v34 = vpop.f32.mrf.mxu1 }
 0x2ea   :  { %v5187_v59 = vadd.f32 %v5186_v13, %v5185_v32 }
 0x2eb   :  { %v5188_v45 = vpop.f32.mrf.mxu0  ;;  %v5208_v37 = vpop.f32.mrf.mxu1 }
 0x2ec   :  { %v4449_v2 = vadd.f32 %v5187_v59, %v5104_v21  ;;  %v5209_v43 = vadd.f32 %v5208_v37, %v5207_v34 }
 0x2ed   :  { %v5189_v10 = vpop.f32.mrf.mxu0  ;;  %v5210_v54 = vpop.f32.mrf.mxu1 }
 0x2ee   :  { %v5190_v41 = vadd.f32 %v5189_v10, %v5188_v45  ;;  %v4490_v24 = vadd.f32 %v5209_v43, %v4449_v2 }
 0x2ef   :  { %v5211_v42 = vpop.f32.mrf.mxu1 }
 0x2f0   :  { %v4452_v31 = vadd.f32 %v5190_v41, %v5104_v21  ;;  %v5212_v44 = vadd.f32 %v5211_v42, %v5210_v54 }
 0x2f2   :  { %v4493_v61 = vadd.f32 %v5212_v44, %v4452_v31 }
 0x317   :  { %v5229_v48 = vpop.f32.mrf.mxu0 }
 0x319   :  { %v5230_v55 = vpop.f32.mrf.mxu0 }
 0x31a   :  { %v5231_v49 = vadd.f32 %v5230_v55, %v5229_v48 }
 0x31b   :  { %v5232_v38 = vpop.f32.mrf.mxu0 }
 0x31c   :  { %v4531_v47 = vadd.f32 %v5231_v49, %v4490_v24 }
 0x31d   :  { %v5233_v50 = vpop.f32.mrf.mxu0 }
 0x31e   :  { %v5234_v52 = vadd.f32 %v5233_v50, %v5232_v38 }
 0x320   :  { %v4534_v58 = vadd.f32 %v5234_v52, %v4493_v61 }
 0x397   :  { %v5251_v23 = vpop.f32.mrf.mxu1 }
 0x399   :  { %v5252_v51 = vpop.f32.mrf.mxu1 }
 0x39a   :  { %v5253_v53 = vadd.f32 %v5252_v51, %v5251_v23 }
 0x39b   :  { %v5254_v57 = vpop.f32.mrf.mxu1 }
 0x39c   :  { %v4572_v1 = vadd.f32 %v5253_v53, %v4531_v47 }
 0x39d   :  { %v5255_v3 = vpop.f32.mrf.mxu1 }
 0x39e   :  { %4578 = vst [vmem:[%s7298_s5] sm:$0xff] %v4572_v1  ;;  %v5256_v5 = vadd.f32 %v5255_v3, %v5254_v57 }
 0x3a0   :  { %v4575_v6 = vadd.f32 %v5256_v5, %v4534_v58 }
 0x3a2   :  { %4579 = vst [vmem:[%s7298_s5 + $0x8] sm:$0xff] %v4575_v6 }

</bundles_post_ra>
